<compile_context>
chip_gen: v7x
topology: tpu7x:2x2x1
jax: 0.10.0
libtpu: 0.0.40
codegen_flags: <defaults>
</compile_context>

<pallas_src>
import functools

import jax
import jax.numpy as jnp
from jax import lax
from jax.experimental import pallas as pl
from jax.experimental.pallas import tpu as pltpu


SUB = 1024  # points per inner chunk (lane-axis, multiple of 128)


def mlp_kernel(x_ref, w1_ref, b1_ref, w2_ref, b2_ref, w3_ref, b3_ref, o_ref):
    """Fused 3-layer MLP on a lane-dense [3, tile] slab of points.

    The tile is processed in SUB-point chunks so the [64, SUB] intermediates
    stay small regardless of how large the (DMA-friendly) tile is.
    """
    cdt = w2_ref.dtype  # MXU compute dtype (bf16 by default, f32 optional)

    # Weights / biases: loaded once per grid step, reused by every chunk.
    w1 = w1_ref[...]   # [64, 3]  f32   (fc1 runs on the VPU)
    b1 = b1_ref[...]   # [64, 1]  f32
    w2 = w2_ref[...]   # [64, 64] cdt
    b2 = b2_ref[...]   # [64, 1]  f32
    w3 = w3_ref[...]   # [8, 64]  cdt   (rows 3..7 are zero padding)
    b3 = b3_ref[...]   # [3, 1]   f32

    n_chunks = x_ref.shape[1] // SUB  # static

    def body(j, carry):
        off = pl.multiple_of(j * SUB, SUB)
        x = x_ref[:, pl.ds(off, SUB)]                       # [3, SUB] f32

        # fc1 + ReLU on the VPU: K=3 is far too small to earn an MXU pass.
        h = (w1[:, 0:1] * x[0:1, :]
             + w1[:, 1:2] * x[1:2, :]
             + w1[:, 2:3] * x[2:3, :]) + b1                 # [64, SUB] f32
        h = jnp.maximum(h, 0.0)

        # fc2 + ReLU on the MXU (bf16 operands by default, f32 accumulate).
        h = jnp.dot(w2, h.astype(cdt), preferred_element_type=jnp.float32)
        h = jnp.maximum(h + b2, 0.0)                        # [64, SUB] f32

        # fc3 on the MXU; rows 3..7 of w3 are zeros and get sliced away.
        y = jnp.dot(w3, h.astype(cdt), preferred_element_type=jnp.float32)
        o_ref[:, pl.ds(off, SUB)] = (y[:3, :] + b3).astype(o_ref.dtype)
        return carry

    lax.fori_loop(0, n_chunks, body, 0)


def _round_up(x, m):
    return (x + m - 1) // m * m


def _cdiv(a, b):
    return (a + b - 1) // b


@functools.partial(jax.jit, static_argnames=("tile_n", "compute_dtype"))
def reprojection_net(x, params, *, tile_n=32768, compute_dtype=jnp.bfloat16):
    """x: [N, 3] float32 -> [N, 3] float32.

    params are PyTorch nn.Linear layout: (w1 [64,3], b1 [64], w2 [64,64],
    b2 [64], w3 [3,64], b3 [3]).
    """
    w1, b1, w2, b2, w3, b3 = params
    N, d_in = x.shape
    assert d_in == 3

    # ---- tiling (all static under jit) -------------------------------------
    # Points live on the 128-lane axis.  Work is split into SUB-point chunks;
    # each grid step owns `spt` chunks (one DMA-friendly slab).  Keep grid >= 2
    # when there is enough work so v7x megacore can split it across cores.
    n_chunks = max(1, _cdiv(N, SUB))
    spt_cap = max(1, _round_up(int(tile_n), SUB) // SUB)
    g = _cdiv(n_chunks, spt_cap)
    if n_chunks >= 2:
        g = max(g, 2)
    spt = _cdiv(n_chunks, g)
    g = _cdiv(n_chunks, spt)
    tile = spt * SUB
    n_alloc = g * tile  # ghost points bounded to ~1/spt of the work (a few %)

    cdt = jnp.dtype(compute_dtype)

    # ---- lane-dense, zero-padded operands ----------------------------------
    xT = jnp.zeros((3, n_alloc), jnp.float32).at[:, :N].set(x.T)
    w1k = w1.astype(jnp.float32)                                 # [64, 3]
    b1k = b1.astype(jnp.float32)[:, None]                        # [64, 1]
    w2k = w2.astype(cdt)                                         # [64, 64]
    b2k = b2.astype(jnp.float32)[:, None]                        # [64, 1]
    w3k = jnp.zeros((8, 64), cdt).at[:3, :].set(w3.astype(cdt))  # [8, 64]
    b3k = b3.astype(jnp.float32)[:, None]                        # [3, 1]

    # Full-array blocks with constant index maps: fetched once, stay resident.
    def full(a):
        return pl.BlockSpec(a.shape, lambda j, _nd=a.ndim: (0,) * _nd)

    param_arrays = (w1k, b1k, w2k, b2k, w3k, b3k)
    param_bytes = sum(int(a.size) * a.dtype.itemsize for a in param_arrays)

    cost = pl.CostEstimate(
        flops=2 * n_alloc * (3 * 64 + 64 * 64 + 64 * 3),
        transcendentals=0,
        bytes_accessed=2 * 3 * n_alloc * 4 + param_bytes,
    )

    # VMEM: double-buffered I/O slabs + resident params + in-kernel chunk
    # intermediates (with headroom).  Only raise the scoped limit when a large
    # user-requested tile actually needs it (v5e's default is 16 MiB).
    io_bytes = 2 * 2 * (3 * tile * 4)
    inner_bytes = 4 * (SUB * 64 * (4 + 4 + 2 + 2) + SUB * 8 * 4)
    vmem_needed = io_bytes + 2 * param_bytes + inner_bytes + (1 << 20)
    extra = {}
    if vmem_needed > (16 << 20):
        extra["vmem_limit_bytes"] = int(min(max(2 * vmem_needed, 32 << 20), 64 << 20))

    outT = pl.pallas_call(
        mlp_kernel,
        out_shape=jax.ShapeDtypeStruct((3, n_alloc), jnp.float32),
        grid_spec=pltpu.PrefetchScalarGridSpec(
            num_scalar_prefetch=0,
            grid=(g,),
            in_specs=[pl.BlockSpec((3, tile), lambda j: (0, j))]
                     + [full(a) for a in param_arrays],
            out_specs=pl.BlockSpec((3, tile), lambda j: (0, j)),
        ),
        compiler_params=pltpu.CompilerParams(
            dimension_semantics=("parallel",),
            # Let XLA fuse the wrapper-side pad/transpose of x^T into the
            # kernel's input instead of a separate HBM round trip.
            allow_input_fusion=[True] + [False] * len(param_arrays),
            **extra,
        ),
        cost_estimate=cost,
    )(xT, *param_arrays)

    # Drop point padding; back to [N, 3].
    return outT[:, :N].T


# --------------------------------------------------------------------------
# Parameter init (PyTorch nn.Linear layout: weight (out, in), bias (out,))
# --------------------------------------------------------------------------
def init_params(key):
    def linear(k, fan_in, fan_out):
        kw, kb = jax.random.split(k)
        bound = 1.0 / jnp.sqrt(fan_in)
        w = jax.random.uniform(kw, (fan_out, fan_in), jnp.float32, -bound, bound)
        b = jax.random.uniform(kb, (fan_out,), jnp.float32, -bound, bound)
        return w, b

    k1, k2, k3 = jax.random.split(key, 3)
    w1, b1 = linear(k1, 3, 64)
    w2, b2 = linear(k2, 64, 64)
    w3, b3 = linear(k3, 64, 3)
    return (w1, b1, w2, b2, w3, b3)


def reference(x, params):
    w1, b1, w2, b2, w3, b3 = params
    h = jnp.maximum(x @ w1.T + b1, 0.0)
    h = jnp.maximum(h @ w2.T + b2, 0.0)
    return h @ w3.T + b3


if __name__ == "__main__":
    key = jax.random.PRNGKey(0)
    k_params, k_x1, k_x2, k_x3 = jax.random.split(key, 4)

    params = init_params(k_params)

    # Small example: 64 points, 3 coordinates each.
    x = jax.random.normal(k_x1, (64, 3), jnp.float32)
    ref = reference(x, params)

    # Default path: bf16 MXU compute, f32 accumulate / bias / ReLU / I/O.
    out = jax.block_until_ready(reprojection_net(x, params))
    assert out.shape == (64, 3)
    assert jnp.allclose(out, ref, atol=5e-2, rtol=5e-2), "bf16 path diverged"

    # Full f32 compute path (accuracy-sensitive callers).
    out_f32 = jax.block_until_ready(
        reprojection_net(x, params, compute_dtype=jnp.float32))
    assert jnp.allclose(out_f32, ref, atol=1e-4, rtol=1e-4), "f32 mismatch"

    # Non-multiple-of-128 N exercises the padding/slicing path.
    x2 = jax.random.normal(k_x2, (200, 3), jnp.float32)
    out2 = jax.block_until_ready(
        reprojection_net(x2, params, compute_dtype=jnp.float32))
    ref2 = reference(x2, params)
    assert out2.shape == (200, 3)
    assert jnp.allclose(out2, ref2, atol=1e-4, rtol=1e-4), "padded-N mismatch"

    # Multi-step grid + multi-chunk inner loop (small tile to force grid > 1).
    x3 = jax.random.normal(k_x3, (5000, 3), jnp.float32)
    out3 = jax.block_until_ready(reprojection_net(x3, params, tile_n=2048))
    ref3 = reference(x3, params)
    assert out3.shape == (5000, 3)
    assert jnp.allclose(out3, ref3, atol=5e-2, rtol=5e-2), "tiled bf16 mismatch"

    print("KERNEL_OK")
</pallas_src>

<mosaic_0001>
module attributes {stable_mosaic.version = 11 : i64} {
  func.func @mlp_kernel(%arg0: i32, %arg1: memref<3x1024xf32, #tpu.memory_space<vmem>>, %arg2: memref<64x3xf32, #tpu.memory_space<vmem>>, %arg3: memref<64x1xf32, #tpu.memory_space<vmem>>, %arg4: memref<64x64xbf16, #tpu.memory_space<vmem>>, %arg5: memref<64x1xf32, #tpu.memory_space<vmem>>, %arg6: memref<8x64xbf16, #tpu.memory_space<vmem>>, %arg7: memref<3x1xf32, #tpu.memory_space<vmem>>, %arg8: memref<3x1024xf32, #tpu.memory_space<vmem>>) attributes {dimension_semantics = [#tpu.dimension_semantics<parallel>], iteration_bounds = array<i64: 1>, scalar_prefetch = 0 : i64, scratch_operands = 0 : i64, tpu.core_type = #tpu.core_type<tc>, window_params = [{transform_indices = @transform_0, window_bounds = array<i64: 3, 1024>}, {pipeline_mode = #tpu.pipeline_mode<synchronous>, transform_indices = @transform_1, window_bounds = array<i64: 64, 3>}, {pipeline_mode = #tpu.pipeline_mode<synchronous>, transform_indices = @transform_2, window_bounds = array<i64: 64, 1>}, {pipeline_mode = #tpu.pipeline_mode<synchronous>, transform_indices = @transform_3, window_bounds = array<i64: 64, 64>}, {pipeline_mode = #tpu.pipeline_mode<synchronous>, transform_indices = @transform_4, window_bounds = array<i64: 64, 1>}, {pipeline_mode = #tpu.pipeline_mode<synchronous>, transform_indices = @transform_5, window_bounds = array<i64: 8, 64>}, {pipeline_mode = #tpu.pipeline_mode<synchronous>, transform_indices = @transform_6, window_bounds = array<i64: 3, 1>}, {transform_indices = @transform_7, window_bounds = array<i64: 3, 1024>}]} {
    %c0 = arith.constant 0 : index
    %c0_0 = arith.constant 0 : index
    %0 = vector.load %arg2[%c0, %c0_0] : memref<64x3xf32, #tpu.memory_space<vmem>>, vector<64x3xf32>
    %c0_1 = arith.constant 0 : index
    %c0_2 = arith.constant 0 : index
    %1 = vector.load %arg3[%c0_1, %c0_2] : memref<64x1xf32, #tpu.memory_space<vmem>>, vector<64x1xf32>
    %c0_3 = arith.constant 0 : index
    %c0_4 = arith.constant 0 : index
    %2 = vector.load %arg4[%c0_3, %c0_4] : memref<64x64xbf16, #tpu.memory_space<vmem>>, vector<64x64xbf16>
    %c0_5 = arith.constant 0 : index
    %c0_6 = arith.constant 0 : index
    %3 = vector.load %arg5[%c0_5, %c0_6] : memref<64x1xf32, #tpu.memory_space<vmem>>, vector<64x1xf32>
    %c0_7 = arith.constant 0 : index
    %c0_8 = arith.constant 0 : index
    %4 = vector.load %arg6[%c0_7, %c0_8] : memref<8x64xbf16, #tpu.memory_space<vmem>>, vector<8x64xbf16>
    %c0_9 = arith.constant 0 : index
    %c0_10 = arith.constant 0 : index
    %5 = vector.load %arg7[%c0_9, %c0_10] : memref<3x1xf32, #tpu.memory_space<vmem>>, vector<3x1xf32>
    %c0_i32 = arith.constant 0 : i32
    %c1024_i32 = arith.constant 1024 : i32
    %6 = arith.muli %c0_i32, %c1024_i32 : i32
    %7 = tpu.assume_multiple %6, 1024 : i32
    %c0_11 = arith.constant 0 : index
    %8 = arith.index_cast %7 : i32 to index
    %9 = vector.load %arg1[%c0_11, %8] : memref<3x1024xf32, #tpu.memory_space<vmem>>, vector<3x1024xf32>
    %10 = vector.extract_strided_slice %0 {offsets = [0, 0], sizes = [64, 1], strides = [1, 1]} : vector<64x3xf32> to vector<64x1xf32>
    %11 = vector.extract_strided_slice %9 {offsets = [0, 0], sizes = [1, 1024], strides = [1, 1]} : vector<3x1024xf32> to vector<1x1024xf32>
    %12 = vector.broadcast %10 : vector<64x1xf32> to vector<64x1024xf32>
    %13 = vector.broadcast %11 : vector<1x1024xf32> to vector<64x1024xf32>
    %14 = arith.mulf %12, %13 : vector<64x1024xf32>
    %15 = vector.extract_strided_slice %0 {offsets = [0, 1], sizes = [64, 1], strides = [1, 1]} : vector<64x3xf32> to vector<64x1xf32>
    %16 = vector.extract_strided_slice %9 {offsets = [1, 0], sizes = [1, 1024], strides = [1, 1]} : vector<3x1024xf32> to vector<1x1024xf32>
    %17 = vector.broadcast %15 : vector<64x1xf32> to vector<64x1024xf32>
    %18 = vector.broadcast %16 : vector<1x1024xf32> to vector<64x1024xf32>
    %19 = arith.mulf %17, %18 : vector<64x1024xf32>
    %20 = arith.addf %14, %19 : vector<64x1024xf32>
    %21 = vector.extract_strided_slice %0 {offsets = [0, 2], sizes = [64, 1], strides = [1, 1]} : vector<64x3xf32> to vector<64x1xf32>
    %22 = vector.extract_strided_slice %9 {offsets = [2, 0], sizes = [1, 1024], strides = [1, 1]} : vector<3x1024xf32> to vector<1x1024xf32>
    %23 = vector.broadcast %21 : vector<64x1xf32> to vector<64x1024xf32>
    %24 = vector.broadcast %22 : vector<1x1024xf32> to vector<64x1024xf32>
    %25 = arith.mulf %23, %24 : vector<64x1024xf32>
    %26 = arith.addf %20, %25 : vector<64x1024xf32>
    %27 = vector.broadcast %1 : vector<64x1xf32> to vector<64x1024xf32>
    %28 = arith.addf %26, %27 : vector<64x1024xf32>
    %cst = arith.constant 0.000000e+00 : f32
    %29 = vector.broadcast %cst : f32 to vector<64x1024xf32>
    %30 = arith.maximumf %28, %29 : vector<64x1024xf32>
    %31 = arith.truncf %30 : vector<64x1024xf32> to vector<64x1024xbf16>
    %cst_12 = arith.constant dense<0.000000e+00> : vector<64x1024xf32>
    %32 = tpu.matmul %2, %31, %cst_12 {dimension_numbers = #tpu.dot_dimension_numbers<[1], [0], [0], [1], [0, 0, 1, 1], [], []>} : vector<64x64xbf16>, vector<64x1024xbf16>, vector<64x1024xf32> -> vector<64x1024xf32>
    %33 = vector.broadcast %3 : vector<64x1xf32> to vector<64x1024xf32>
    %34 = arith.addf %32, %33 : vector<64x1024xf32>
    %cst_13 = arith.constant 0.000000e+00 : f32
    %35 = vector.broadcast %cst_13 : f32 to vector<64x1024xf32>
    %36 = arith.maximumf %34, %35 : vector<64x1024xf32>
    %37 = arith.truncf %36 : vector<64x1024xf32> to vector<64x1024xbf16>
    %cst_14 = arith.constant dense<0.000000e+00> : vector<8x1024xf32>
    %38 = tpu.matmul %4, %37, %cst_14 {dimension_numbers = #tpu.dot_dimension_numbers<[1], [0], [0], [1], [0, 0, 1, 1], [], []>} : vector<8x64xbf16>, vector<64x1024xbf16>, vector<8x1024xf32> -> vector<8x1024xf32>
    %39 = vector.extract_strided_slice %38 {offsets = [0, 0], sizes = [3, 1024], strides = [1, 1]} : vector<8x1024xf32> to vector<3x1024xf32>
    %40 = vector.broadcast %5 : vector<3x1xf32> to vector<3x1024xf32>
    %41 = arith.addf %39, %40 : vector<3x1024xf32>
    %c0_15 = arith.constant 0 : index
    %42 = arith.index_cast %7 : i32 to index
    %43 = vector.load %arg8[%c0_15, %42] : memref<3x1024xf32, #tpu.memory_space<vmem>>, vector<3x1024xf32>
    tpu.vector_store %arg8[%c0_15, %42], %41 {strides = array<i32>} : memref<3x1024xf32, #tpu.memory_space<vmem>>, vector<3x1024xf32>,
    %c1_i32 = arith.constant 1 : i32
    return
  }
  func.func @transform_0(%arg0: i32) -> (i32, i32) {
    %c0_i32 = arith.constant 0 : i32
    %c0_i32_0 = arith.constant 0 : i32
    return %c0_i32, %arg0 : i32, i32
  }
  func.func @transform_1(%arg0: i32) -> (i32, i32) {
    %c0_i32 = arith.constant 0 : i32
    %c0_i32_0 = arith.constant 0 : i32
    %c0_i32_1 = arith.constant 0 : i32
    return %c0_i32, %c0_i32_0 : i32, i32
  }
  func.func @transform_2(%arg0: i32) -> (i32, i32) {
    %c0_i32 = arith.constant 0 : i32
    %c0_i32_0 = arith.constant 0 : i32
    %c0_i32_1 = arith.constant 0 : i32
    return %c0_i32, %c0_i32_0 : i32, i32
  }
  func.func @transform_3(%arg0: i32) -> (i32, i32) {
    %c0_i32 = arith.constant 0 : i32
    %c0_i32_0 = arith.constant 0 : i32
    %c0_i32_1 = arith.constant 0 : i32
    return %c0_i32, %c0_i32_0 : i32, i32
  }
  func.func @transform_4(%arg0: i32) -> (i32, i32) {
    %c0_i32 = arith.constant 0 : i32
    %c0_i32_0 = arith.constant 0 : i32
    %c0_i32_1 = arith.constant 0 : i32
    return %c0_i32, %c0_i32_0 : i32, i32
  }
  func.func @transform_5(%arg0: i32) -> (i32, i32) {
    %c0_i32 = arith.constant 0 : i32
    %c0_i32_0 = arith.constant 0 : i32
    %c0_i32_1 = arith.constant 0 : i32
    return %c0_i32, %c0_i32_0 : i32, i32
  }
  func.func @transform_6(%arg0: i32) -> (i32, i32) {
    %c0_i32 = arith.constant 0 : i32
    %c0_i32_0 = arith.constant 0 : i32
    %c0_i32_1 = arith.constant 0 : i32
    return %c0_i32, %c0_i32_0 : i32, i32
  }
  func.func @transform_7(%arg0: i32) -> (i32, i32) {
    %c0_i32 = arith.constant 0 : i32
    %c0_i32_0 = arith.constant 0 : i32
    return %c0_i32, %arg0 : i32, i32
  }
}

</mosaic_0001>

<bundles_post_ra>
// kernel: reprojection_net.2
= control target key start
LH: loop header
LB: loop body
LE: loop exit
PB: predicated region body
PF: predicated region fallthrough
CT: control target
= control target key end

     0   :  { %s2736_s0 = inlined_call_operand.vmem [shape: f32[64,3], index: 0, kind: input, shape index: {}]   ;;  %s2737_s1 = inlined_call_operand.vmem [shape: f32[64,1], index: 1, kind: input, shape index: {}]   ;;  %s2738_s2 = inlined_call_operand.vmem [shape: bf16[64,64], index: 2, kind: input, shape index: {}]   ;;  %s2739_s3 = inlined_call_operand.vmem [shape: f32[64,1], index: 3, kind: input, shape index: {}]   ;;  %s2740_s4 = inlined_call_operand.vmem [shape: bf16[8,64], index: 4, kind: input, shape index: {}]   ;;  %s2741_s5 = inlined_call_operand.vmem [shape: f32[3,1], index: 5, kind: input, shape index: {}]   ;;  %s2742_s6 = inlined_call_operand.vmem [shape: f32[3,64], index: 6, kind: input, shape index: {}]   ;;  %s2743_s7 = inlined_call_operand.<no memory space> [shape: f32[], index: 7, kind: input, shape index: {}]   ;;  %s2744_s8 = inlined_call_operand.vmem [shape: f32[3,1024], index: 8, kind: output, shape index: {}]  }
   0x1   :  { %v13_v0 = vstv %s2743_s7 }
   0x2   :  { %v63_v1 = vld [vmem:[%s2736_s0] sm:$0xff]  ;;  %v29_v2 = vlaneseq  ;;  %43 = vst [vmem:[#allocation7 + $0x4] sm:$0xf] %v13_v0  ;;  %46 = vst [vmem:[#allocation7 + $0x8] sm:$0xf] %v13_v0  ;;  %v1656_v3 = vmov 2  }
   0x3   :  { %49 = vst [vmem:[#allocation7 + $0xc] sm:$0xf] %v13_v0  ;;  %52 = vst [vmem:[#allocation7 + $0x10] sm:$0xf] %v13_v0  ;;  %1638 = vset.pattern.permute.xlu0 %v1656_v3  ;;  %v1657_v4 = vmov 1   ;;  %v65_v6 = vld [vmem:[%s2736_s0 + $0x10] sm:$0xff] }
   0x4   :  { %55 = vst [vmem:[#allocation7 + $0x14] sm:$0xf] %v13_v0  ;;  %58 = vst [vmem:[#allocation7 + $0x18] sm:$0xf] %v13_v0  ;;  %1637 = vset.pattern.permute.xlu1 %v1657_v4  ;;  %514 = vperm.xlu0 %1638, %v63_v1   ;;  %v1712_v5 = vshrl.u32 %v29_v2, 7  ;;  %v64_v7 = vld [vmem:[%s2736_s0 + $0x8] sm:$0xff] }
   0x5   :  { %61 = vst [vmem:[#allocation7 + $0x1c] sm:$0xf] %v13_v0  ;;  %282 = vperm.xlu1 %1637, %v63_v1   ;;  %v35_v8 = vand.u32 127, %v29_v2  ;;  %v2745_v9 = vmov 0   ;;  %v68_v10 = vld [vmem:[%s2736_s0 + $0x28] sm:$0xff]  ;;  %v67_v14 = vld [vmem:[%s2736_s0 + $0x20] sm:$0xff] }
   0x6   :  { %1050 = vmatprep.mubr.bf16.mxu0 %v2745_v9  ;;  %1123 = vmatprep.mubr.bf16.mxu1 %v2745_v9  ;;  %vm32_vm0 = vcmp.lt.s32.totalorder %v1712_v5, 3  ;;  %v28_v11 = vld [vmem:[%s2742_s6] sm:$0x7]  ;;  %v70_v15 = vld [vmem:[%s2736_s0 + $0x38] sm:$0xff]  ;;  %v72_v18 = vld [vmem:[%s2737_s1 + $0x8] sm:$0xff]  ;;  %v315_v35 = vsub.s32 1, %v1712_v5 }
   0x7   :  { %vm37_vm1 = vcmp.lt.s32.totalorder %v35_v8, 64  ;;  %v33_v12 = vsel %vm32_vm0, %v28_v11, %v13_v0  ;;  %v66_v16 = vld [vmem:[%s2736_s0 + $0x18] sm:$0xff]  ;;  %v71_v17 = vld [vmem:[%s2737_s1] sm:$0xff]  ;;  %v69_v19 = vld [vmem:[%s2736_s0 + $0x30] sm:$0xff]  ;;  %v319_v36 = vsub.s32 5, %v1712_v5  ;;  %v551_v37 = vsub.s32 6, %v1712_v5 }
   0x8   :  { %522 = vperm.xlu0 %1638, %v65_v6   ;;  %v38_v13 = vsel %vm37_vm1, %v33_v12, %v13_v0  ;;  %v75_v20 = vld [vmem:[%s2737_s1 + $0x20] sm:$0xff]  ;;  %v78_v21 = vld [vmem:[%s2737_s1 + $0x38] sm:$0xff]  ;;  %v88_v22 = vld [vmem:[%s2739_s3 + $0x8] sm:$0xff]  ;;  %v147_v38 = vsub.s32 0, %v1712_v5  ;;  %v151_v39 = vsub.s32 4, %v1712_v5  ;;  %v547_v40 = vsub.s32 2, %v1712_v5 }
   0x9   :  { %286 = vperm.xlu1 %1637, %v64_v7   ;;  %40 = vst [vmem:[#allocation7] sm:$0xf] %v38_v13  ;;  %v90_v23 = vld [vmem:[%s2739_s3 + $0x18] sm:$0xff]  ;;  %v73_v24 = vld [vmem:[%s2737_s1 + $0x10] sm:$0xff]  ;;  %v92_v25 = vld [vmem:[%s2739_s3 + $0x28] sm:$0xff]  ;;  %vm1005_vm2 = vcmask 523264  }
   0xa   :  { %v74_v26 = vld [vmem:[%s2737_s1 + $0x18] sm:$0xff]  ;;  %v76_v28 = vld [vmem:[%s2737_s1 + $0x28] sm:$0xff]  ;;  %v77_v29 = vld [vmem:[%s2737_s1 + $0x30] sm:$0xff] }
   0xb   :  { %v94_v27 = vld [vmem:[%s2739_s3 + $0x38] sm:$0xff]  ;;  %v87_v30 = vld [vmem:[%s2739_s3] sm:$0xff]  ;;  %v89_v31 = vld [vmem:[%s2739_s3 + $0x10] sm:$0xff] }
   0xc   :  { %534 = vperm.xlu0 %1638, %v68_v10   ;;  %v91_v32 = vld [vmem:[%s2739_s3 + $0x20] sm:$0xff]  ;;  %v93_v33 = vld [vmem:[%s2739_s3 + $0x30] sm:$0xff]  ;;  %v98_v41 = vld [vmem:[#allocation7 + $0x8] sm:$0x77] }
   0xd   :  { %1639 = vset.pattern.permute.xlu1 %v1656_v3  ;;  %v96_v34 = vld [vmem:[%s2741_s5] sm:$0x7]  ;;  %v99_v42 = vld [vmem:[#allocation7 + $0x10] sm:$0x77]  ;;  %v328_v43 = vrot.slane %v98_v41, %v319_v36  ;;  %v560_v44 = vrot.slane %v98_v41, %v551_v37  ;;  %v324_v45 = vrot.slane %v98_v41, %v315_v35  ;;  %v160_v46 = vrot.slane %v98_v41, %v151_v39  ;;  %v100_v55 = vld [vmem:[#allocation7 + $0x18] sm:$0x77] }
   0xe   :  { %518 = vperm.xlu1 %1639, %v64_v7   ;;  %v156_v47 = vrot.slane %v98_v41, %v147_v38  ;;  %v556_v48 = vrot.slane %v98_v41, %v547_v40  ;;  %v336_v49 = vrot.slane %v99_v42, %v319_v36  ;;  %v168_v51 = vrot.slane %v99_v42, %v151_v39 }
   0xf   :  { %v1811_v52 = vrot.slane %v328_v43, %v315_v35  ;;  %v1813_v53 = vrot.slane %v560_v44, %v547_v40  ;;  %v1815_v54 = vrot.slane %v324_v45, %v315_v35  ;;  %v1817_v56 = vrot.slane %v160_v46, %v147_v38 }
  0x10   :  { %1646 = vset.pattern.permute.xlu0 %v1657_v4  ;;  %v97_v50 = vld [vmem:[#allocation7] sm:$0x77]  ;;  %v1819_v57 = vrot.slane %v156_v47, %v147_v38  ;;  %v1821_v58 = vrot.slane %v556_v48, %v547_v40  ;;  %v1823_v59 = vrot.slane %v336_v49, %v315_v35  ;;  %v1825_v2 = vrot.slane %v168_v51, %v147_v38 }
  0x11   :  { %298 = vperm.xlu0 %1646, %v67_v14   ;;  %v152_v60 = vrot.slane %v97_v50, %v151_v39  ;;  %v320_v61 = vrot.slane %v97_v50, %v319_v36  ;;  %v552_v62 = vrot.slane %v97_v50, %v551_v37  ;;  %v148_v63 = vrot.slane %v97_v50, %v147_v38 }
  0x12   :  { %1640 = vset.pattern.permute.xlu1 %v2745_v9  ;;  %2791 = vst [vmem:[#allocation8_spill] sm:$0xff] %v1823_v59  ;;  %v316_v0 = vrot.slane %v97_v50, %v315_v35  ;;  %v576_v5 = vrot.slane %v100_v55, %v551_v37  ;;  %v176_v8 = vrot.slane %v100_v55, %v151_v39 }
  0x13   :  { %113 = vperm.xlu1 %1640, %v65_v6   ;;  %v564_v11 = vrot.slane %v99_v42, %v547_v40  ;;  %v572_v12 = vrot.slane %v100_v55, %v547_v40  ;;  %v1827_v13 = vrot.slane %v152_v60, %v147_v38 }
  0x15   :  { %310 = vperm.xlu0 %1646, %v70_v15  }
  0x17   :  { %1641 = vset.pattern.permute.xlu1 %v1657_v4 }
  0x18   :  { %290 = vperm.xlu1 %1641, %v65_v6   ;;  %v332_v6 = vrot.slane %v99_v42, %v315_v35 }
  0x19   :  { %1649 = vset.pattern.permute.xlu0 %v2745_v9 }
  0x1a   :  { %103 = vperm.xlu0 %1649, %v63_v1   ;;  %v548_v1 = vrot.slane %v97_v50, %v547_v40 }
  0x1c   :  { %294 = vperm.xlu1 %1641, %v66_v16  }
  0x1e   :  { %108 = vperm.xlu0 %1649, %v64_v7   ;;  %v340_v7 = vrot.slane %v100_v55, %v315_v35 }
  0x20   :  { %1642 = vset.pattern.permute.xlu1 %v1656_v3 }
  0x21   :  { %526 = vperm.xlu1 %1642, %v66_v16  }
  0x22   :  { %118 = vperm.xlu0 %1649, %v66_v16   ;;  %v172_v16 = vrot.slane %v100_v55, %v147_v38 }
  0x25   :  { %1643 = vset.pattern.permute.xlu1 %v2745_v9 }
  0x26   :  { %747 = vperm.xlu1 %1643, %v71_v17   ;;  %752 = vperm.xlu0 %1649, %v72_v18   ;;  %v1833_v17 = vrot.slane %v148_v63, %v147_v38  ;;  %v1835_v18 = vrot.slane %v316_v0, %v315_v35 }
  0x2a   :  { %123 = vperm.xlu1 %1643, %v67_v14   ;;  %133 = vperm.xlu0 %1649, %v69_v19  }
  0x2e   :  { %128 = vperm.xlu1 %1643, %v68_v10   ;;  %767 = vperm.xlu0 %1649, %v75_v20  }
  0x32   :  { %1644 = vset.pattern.permute.xlu1 %v1657_v4  ;;  %782 = vperm.xlu0 %1649, %v78_v21  }
  0x33   :  { %302 = vperm.xlu1 %1644, %v68_v10   ;;  %v164_v10 = vrot.slane %v99_v42, %v147_v38 }
  0x36   :  { %952 = vperm.xlu0 %1649, %v88_v22  }
  0x37   :  { %1645 = vset.pattern.permute.xlu1 %v1656_v3 }
  0x38   :  { %530 = vperm.xlu1 %1645, %v67_v14   ;;  %v1829_v14 = vrot.slane %v320_v61, %v315_v35 }
  0x3a   :  { %962 = vperm.xlu0 %1649, %v90_v23  }
  0x3c   :  { %1647 = vset.pattern.permute.xlu1 %v2745_v9 }
  0x3d   :  { %757 = vperm.xlu1 %1647, %v73_v24   ;;  %v1843_v24 = vrot.slane %v576_v5, %v547_v40 }
  0x3e   :  { %972 = vperm.xlu0 %1649, %v92_v25   ;;  %v1845_v25 = vrot.slane %v332_v6, %v315_v35 }
  0x3f   :  { %2794 = vst [vmem:[#allocation11_spill] sm:$0xff] %v1843_v24 }
  0x40   :  { %2795 = vst [vmem:[#allocation12_spill] sm:$0xff] %v1845_v25 }
  0x41   :  { %762 = vperm.xlu1 %1647, %v74_v26   ;;  %v1847_v26 = vrot.slane %v340_v7, %v315_v35 }
  0x42   :  { %982 = vperm.xlu0 %1649, %v94_v27   ;;  %v1849_v27 = vrot.slane %v176_v8, %v147_v38 }
  0x43   :  { %2796 = vst [vmem:[#allocation13_spill] sm:$0xff] %v1847_v26 }
  0x44   :  { %2797 = vst [vmem:[#allocation14_spill] sm:$0xff] %v1849_v27 }
  0x45   :  { %138 = vperm.xlu1 %1647, %v70_v15  }
  0x49   :  { %1648 = vset.pattern.permute.xlu1 %v1657_v4  ;;  %v568_v4 = vrot.slane %v99_v42, %v551_v37 }
  0x4a   :  { %306 = vperm.xlu1 %1648, %v69_v19  }
  0x4b   :  { %v1841_v23 = vrot.slane %v568_v4, %v547_v40 }
  0x4d   :  { %2793 = vst [vmem:[#allocation10_spill] sm:$0xff] %v1841_v23 }
  0x4e   :  { %1650 = vset.pattern.permute.xlu1 %v1656_v3  ;;  %v344_v3 = vrot.slane %v100_v55, %v319_v36 }
  0x4f   :  { %538 = vperm.xlu1 %1650, %v69_v19   ;;  %v1837_v19 = vrot.slane %v548_v1, %v547_v40 }
  0x50   :  { %v1839_v20 = vrot.slane %v344_v3, %v315_v35 }
  0x52   :  { %2792 = vst [vmem:[#allocation9_spill] sm:$0xff] %v1839_v20 }
  0x53   :  { %542 = vperm.xlu1 %1650, %v70_v15   ;;  %v1831_v15 = vrot.slane %v552_v62, %v547_v40 }
  0x57   :  { %1651 = vset.pattern.permute.xlu1 %v2745_v9 }
  0x58   :  { %772 = vperm.xlu1 %1651, %v76_v28   ;;  %v1851_v28 = vrot.slane %v164_v10, %v147_v38 }
  0x5a   :  { %2798 = vst [vmem:[#allocation15_spill] sm:$0xff] %v1851_v28 }
  0x5c   :  { %777 = vperm.xlu1 %1651, %v77_v29   ;;  %v1853_v29 = vrot.slane %v564_v11, %v547_v40 }
  0x5e   :  { %2799 = vst [vmem:[#allocation16_spill] sm:$0xff] %v1853_v29 }
  0x60   :  { %947 = vperm.xlu1 %1651, %v87_v30   ;;  %v1855_v30 = vrot.slane %v572_v12, %v547_v40 }
  0x62   :  { %2800 = vst [vmem:[#allocation17_spill] sm:$0xff] %v1855_v30 }
  0x64   :  { %957 = vperm.xlu1 %1651, %v89_v31  }
  0x68   :  { %967 = vperm.xlu1 %1651, %v91_v32  }
  0x6c   :  { %977 = vperm.xlu1 %1651, %v93_v33  }
  0x70   :  { %1575 = vperm.xlu1 %1651, %v96_v34   ;;  %v1866_v34 = vrot.slane %v172_v16, %v147_v38 }
  0x72   :  { %2801 = vst [vmem:[#allocation18_spill] sm:$0xff] %v1866_v34 }
  0x83   :  { %v515_v22 = vpop.permute.xlu0 %514 }
  0x84   :  { %v283_v21 = vpop.permute.xlu1 %282  ;;  %v1861_v32 = vmul.f32 %v1831_v15, %v515_v22  ;;  %v1872_v36 = vmul.f32 %v1841_v23, %v515_v22  ;;  %v1878_v39 = vmul.f32 %v1843_v24, %v515_v22  ;;  %v1884_v38 = vmul.f32 %v1853_v29, %v515_v22 }
  0x85   :  { %v1858_v31 = vmul.f32 %v1829_v14, %v283_v21  ;;  %v1864_v33 = vmul.f32 %v1811_v52, %v283_v21  ;;  %v1869_v35 = vmul.f32 %v1823_v59, %v283_v21  ;;  %v1875_v37 = vmul.f32 %v1839_v20, %v283_v21 }
  0x86   :  { %2802 = vst [vmem:[#allocation19_spill] sm:$0xff] %v1872_v36  ;;  %2804 = vst [vmem:[#allocation21_spill] sm:$0xff] %v1878_v39  ;;  %v1881_v42 = vmul.f32 %v1845_v25, %v283_v21  ;;  %v1887_v43 = vmul.f32 %v1847_v26, %v283_v21  ;;  %v1890_v44 = vmul.f32 %v1855_v30, %v515_v22 }
  0x87   :  { %2803 = vst [vmem:[#allocation20_spill] sm:$0xff] %v1875_v37  ;;  %v523_v41 = vpop.permute.xlu0 %522  ;;  %2806 = vst [vmem:[#allocation23_spill] sm:$0xff] %v1884_v38  ;;  %v1893_v45 = vmul.f32 %v1813_v53, %v515_v22  ;;  %v1896_v46 = vmul.f32 %v1835_v18, %v283_v21  ;;  %v1899_v47 = vmul.f32 %v1837_v19, %v515_v22 }
  0x88   :  { %v287_v40 = vpop.permute.xlu1 %286  ;;  %2805 = vst [vmem:[#allocation22_spill] sm:$0xff] %v1881_v42  ;;  %2807 = vst [vmem:[#allocation24_spill] sm:$0xff] %v1887_v43  ;;  %v1902_v48 = vmul.f32 %v1815_v54, %v283_v21  ;;  %v1914_v55 = vmul.f32 %v1821_v58, %v515_v22  ;;  %v1929_v1 = vmul.f32 %v1841_v23, %v523_v41 }
  0x89   :  { %2808 = vst [vmem:[#allocation25_spill] sm:$0xff] %v1890_v44  ;;  %v1905_v49 = vmul.f32 %v1829_v14, %v287_v40  ;;  %v1908_v50 = vmul.f32 %v1811_v52, %v287_v40  ;;  %v1911_v51 = vmul.f32 %v1835_v18, %v287_v40  ;;  %v1917_v60 = vmul.f32 %v1823_v59, %v287_v40 }
  0x8a   :  { %v1920_v61 = vmul.f32 %v1839_v20, %v287_v40  ;;  %v1923_v62 = vmul.f32 %v1845_v25, %v287_v40  ;;  %v1926_v63 = vmul.f32 %v1847_v26, %v287_v40  ;;  %2812 = vst [vmem:[#allocation29_spill] sm:$0xff] %v1929_v1  ;;  %v1932_v3 = vmul.f32 %v1843_v24, %v523_v41 }
  0x8b   :  { %v535_v0 = vpop.permute.xlu0 %534  ;;  %v1935_v4 = vmul.f32 %v1853_v29, %v523_v41  ;;  %v1938_v5 = vmul.f32 %v1855_v30, %v523_v41  ;;  %v1953_v12 = vmul.f32 %v1815_v54, %v287_v40  ;;  %v634_v16 = vmul.f32 %v1831_v15, %v523_v41 }
  0x8c   :  { %2809 = vst [vmem:[#allocation26_spill] sm:$0xff] %v1920_v61  ;;  %2810 = vst [vmem:[#allocation27_spill] sm:$0xff] %v1923_v62  ;;  %v1941_v7 = vmul.f32 %v1831_v15, %v535_v0  ;;  %v1944_v8 = vmul.f32 %v1813_v53, %v535_v0  ;;  %v1947_v10 = vmul.f32 %v1837_v19, %v535_v0 }
  0x8d   :  { %2811 = vst [vmem:[#allocation28_spill] sm:$0xff] %v1926_v63  ;;  %2813 = vst [vmem:[#allocation30_spill] sm:$0xff] %v1932_v3  ;;  %v519_v6 = vpop.permute.xlu1 %518  ;;  %v1950_v11 = vmul.f32 %v1821_v58, %v535_v0  ;;  %v1957_v21 = vmul.f32 %v1813_v53, %v523_v41  ;;  %v1960_v22 = vmul.f32 %v1837_v19, %v523_v41 }
  0x8e   :  { %2814 = vst [vmem:[#allocation31_spill] sm:$0xff] %v1935_v4  ;;  %2815 = vst [vmem:[#allocation32_spill] sm:$0xff] %v1938_v5  ;;  %v1963_v9 = vmul.f32 %v1841_v23, %v519_v6  ;;  %v1966_v5 = vmul.f32 %v1843_v24, %v519_v6  ;;  %v1969_v4 = vmul.f32 %v1853_v29, %v519_v6 }
  0x8f   :  { %2816 = vst [vmem:[#allocation33_spill] sm:$0xff] %v1941_v7  ;;  %2817 = vst [vmem:[#allocation34_spill] sm:$0xff] %v1944_v8  ;;  %v1972_v40 = vmul.f32 %v1855_v30, %v519_v6  ;;  %v1975_v3 = vmul.f32 %v1841_v23, %v535_v0  ;;  %v1978_v1 = vmul.f32 %v1843_v24, %v535_v0 }
  0x90   :  { %2818 = vst [vmem:[#allocation35_spill] sm:$0xff] %v1947_v10  ;;  %2819 = vst [vmem:[#allocation36_spill] sm:$0xff] %v1950_v11  ;;  %v1981_v44 = vmul.f32 %v1853_v29, %v535_v0  ;;  %v1984_v63 = vmul.f32 %v1855_v30, %v535_v0  ;;  %v299_v43 = vpop.permute.xlu0 %298  ;;  %v1987_v38 = vmul.f32 %v1831_v15, %v519_v6 }
  0x91   :  { %2820 = vst [vmem:[#allocation37_spill] sm:$0xff] %v1963_v9  ;;  %2821 = vst [vmem:[#allocation38_spill] sm:$0xff] %v1966_v5  ;;  %v2003_v0 = vmul.f32 %v1835_v18, %v299_v43  ;;  %v2025_v8 = vmul.f32 %v1823_v59, %v299_v43  ;;  %v2028_v7 = vmul.f32 %v1839_v20, %v299_v43 }
  0x92   :  { %2822 = vst [vmem:[#allocation39_spill] sm:$0xff] %v1969_v4  ;;  %2823 = vst [vmem:[#allocation40_spill] sm:$0xff] %v1972_v40  ;;  %v1990_v4 = vmul.f32 %v1813_v53, %v519_v6  ;;  %v1993_v40 = vmul.f32 %v1837_v19, %v519_v6  ;;  %v114_v24 = vpop.permute.xlu1 %113  ;;  %v2031_v5 = vmul.f32 %v1845_v25, %v299_v43 }
  0x93   :  { %2824 = vst [vmem:[#allocation41_spill] sm:$0xff] %v1975_v3  ;;  %2825 = vst [vmem:[#allocation42_spill] sm:$0xff] %v1978_v1  ;;  %v635_v3 = vmul.f32 %v1821_v58, %v523_v41  ;;  %v1997_v1 = vmul.f32 %v1821_v58, %v519_v6  ;;  %v234_v30 = vmul.f32 %v1827_v13, %v114_v24 }
  0x94   :  { %2826 = vst [vmem:[#allocation43_spill] sm:$0xff] %v1981_v44  ;;  %2827 = vst [vmem:[#allocation44_spill] sm:$0xff] %v1984_v63  ;;  %v2000_v44 = vmul.f32 %v1829_v14, %v299_v43  ;;  %v2006_v63 = vmul.f32 %v1815_v54, %v299_v43  ;;  %v236_v29 = vmul.f32 %v1817_v56, %v114_v24  ;;  %v311_v10 = vpop.permute.xlu0 %310 }
  0x95   :  { %v233_v23 = vmul.f32 %v1833_v17, %v114_v24  ;;  %v235_v41 = vmul.f32 %v1819_v57, %v114_v24  ;;  %v2013_v6 = vmul.f32 %v1825_v2, %v114_v24  ;;  %v2016_v62 = vmul.f32 %v1849_v27, %v114_v24  ;;  %2832 = vst [vmem:[#allocation49_spill] sm:$0xff] %v2025_v8 }
  0x96   :  { %v2019_v42 = vmul.f32 %v1851_v28, %v114_v24  ;;  %v2022_v11 = vmul.f32 %v1866_v34, %v114_v24  ;;  %2833 = vst [vmem:[#allocation50_spill] sm:$0xff] %v2028_v7  ;;  %2834 = vst [vmem:[#allocation51_spill] sm:$0xff] %v2031_v5  ;;  %v2043_v24 = vmul.f32 %v1835_v18, %v311_v10 }
  0x97   :  { %2828 = vst [vmem:[#allocation45_spill] sm:$0xff] %v2013_v6  ;;  %2829 = vst [vmem:[#allocation46_spill] sm:$0xff] %v2016_v62  ;;  %v2034_v6 = vmul.f32 %v1847_v26, %v299_v43  ;;  %v2037_v62 = vmul.f32 %v1829_v14, %v311_v10  ;;  %v2046_v8 = vmul.f32 %v1815_v54, %v311_v10 }
  0x98   :  { %2830 = vst [vmem:[#allocation47_spill] sm:$0xff] %v2019_v42  ;;  %2831 = vst [vmem:[#allocation48_spill] sm:$0xff] %v2022_v11  ;;  %v2040_v42 = vmul.f32 %v1811_v52, %v311_v10  ;;  %v291_v11 = vpop.permute.xlu1 %290  ;;  %v2049_v7 = vmul.f32 %v1823_v59, %v311_v10  ;;  %v2052_v5 = vmul.f32 %v1839_v20, %v311_v10 }
  0x99   :  { %2835 = vst [vmem:[#allocation52_spill] sm:$0xff] %v2034_v6  ;;  %2836 = vst [vmem:[#allocation53_spill] sm:$0xff] %v2037_v62  ;;  %v2055_v6 = vmul.f32 %v1845_v25, %v311_v10  ;;  %v2058_v62 = vmul.f32 %v1847_v26, %v311_v10  ;;  %v401_v39 = vmul.f32 %v1835_v18, %v291_v11 }
  0x9a   :  { %2837 = vst [vmem:[#allocation54_spill] sm:$0xff] %v2040_v42  ;;  %2838 = vst [vmem:[#allocation55_spill] sm:$0xff] %v2043_v24  ;;  %v402_v42 = vmul.f32 %v1829_v14, %v291_v11  ;;  %v404_v24 = vmul.f32 %v1811_v52, %v291_v11  ;;  %v2065_v61 = vmul.f32 %v1823_v59, %v291_v11 }
  0x9b   :  { %2839 = vst [vmem:[#allocation56_spill] sm:$0xff] %v2046_v8  ;;  %2840 = vst [vmem:[#allocation57_spill] sm:$0xff] %v2049_v7  ;;  %v403_v8 = vmul.f32 %v1815_v54, %v291_v11  ;;  %v2068_v7 = vmul.f32 %v1839_v20, %v291_v11  ;;  %v2074_v10 = vmul.f32 %v1847_v26, %v291_v11 }
  0x9c   :  { %2841 = vst [vmem:[#allocation58_spill] sm:$0xff] %v2052_v5  ;;  %2842 = vst [vmem:[#allocation59_spill] sm:$0xff] %v2055_v6  ;;  %v2071_v5 = vmul.f32 %v1845_v25, %v291_v11  ;;  %v466_v6 = vadd.f32 %v402_v42, %v234_v30  ;;  %v468_v37 = vadd.f32 %v404_v24, %v236_v29  ;;  %v2078_v34 = vpop.permute.xlu1 %294 }
  0x9d   :  { %2843 = vst [vmem:[#allocation60_spill] sm:$0xff] %v2058_v62  ;;  %2844 = vst [vmem:[#allocation61_spill] sm:$0xff] %v2065_v61  ;;  %v2076_v62 = vpop.permute.xlu0 %103  ;;  %v465_v9 = vadd.f32 %v401_v39, %v233_v23  ;;  %v467_v36 = vadd.f32 %v403_v8, %v235_v41  ;;  %v410_v30 = vmul.f32 %v1829_v14, %v2078_v34 }
  0x9e   :  { %2845 = vst [vmem:[#allocation62_spill] sm:$0xff] %v2068_v7  ;;  %2846 = vst [vmem:[#allocation63_spill] sm:$0xff] %v2071_v5  ;;  %v218_v61 = vmul.f32 %v1827_v13, %v2076_v62  ;;  %v220_v7 = vmul.f32 %v1817_v56, %v2076_v62  ;;  %v217_v5 = vmul.f32 %v1833_v17, %v2076_v62 }
  0x9f   :  { %2847 = vst [vmem:[#allocation64_spill] sm:$0xff] %v2074_v10  ;;  %2848 = vst [vmem:[#allocation65_spill] sm:$0xff] %v2078_v34  ;;  %v219_v11 = vmul.f32 %v1819_v57, %v2076_v62  ;;  %v2090_v29 = vadd.f32 %v634_v16, %v466_v6  ;;  %v412_v23 = vmul.f32 %v1811_v52, %v2078_v34 }
  0xa0   :  { %v2095_v39 = vmul.f32 %v1811_v52, %v299_v43  ;;  %v450_v42 = vadd.f32 %v1858_v31, %v218_v61  ;;  %v452_v8 = vadd.f32 %v1864_v33, %v220_v7  ;;  %v449_v41 = vadd.f32 %v1896_v46, %v217_v5 }
  0xa1   :  { %v451_v24 = vadd.f32 %v1902_v48, %v219_v11  ;;  %v2101_v10 = vpop.permute.xlu0 %108  ;;  %v2104_v26 = vadd.f32 %v1957_v21, %v468_v37  ;;  %v409_v16 = vmul.f32 %v1835_v18, %v2078_v34  ;;  %v2109_v6 = vadd.f32 %v1960_v22, %v465_v9  ;;  %v2120_v37 = vpop.permute.xlu1 %526 }
  0xa2   :  { %v411_v31 = vmul.f32 %v1815_v54, %v2078_v34  ;;  %v226_v33 = vmul.f32 %v1827_v13, %v2101_v10  ;;  %v682_v43 = vadd.f32 %v1861_v32, %v450_v42  ;;  %v228_v46 = vmul.f32 %v1817_v56, %v2101_v10  ;;  %2849 = vst [vmem:[#allocation66_spill] sm:$0xff] %v2120_v37 }
  0xa3   :  { %v2118_v48 = vadd.f32 %v635_v3, %v467_v36  ;;  %v684_v61 = vadd.f32 %v1893_v45, %v452_v8  ;;  %v225_v9 = vmul.f32 %v1833_v17, %v2101_v10  ;;  %v681_v5 = vadd.f32 %v1899_v47, %v449_v41 }
  0xa4   :  { %v227_v7 = vmul.f32 %v1819_v57, %v2101_v10  ;;  %v458_v21 = vadd.f32 %v1905_v49, %v226_v33  ;;  %v460_v32 = vadd.f32 %v1908_v50, %v228_v46  ;;  %v683_v22 = vadd.f32 %v1914_v55, %v451_v24 }
  0xa5   :  { %v642_v36 = vmul.f32 %v1831_v15, %v2120_v37  ;;  %v2133_v3 = vpop.permute.xlu0 %118  ;;  %v457_v45 = vadd.f32 %v1911_v51, %v225_v9  ;;  %v644_v47 = vmul.f32 %v1813_v53, %v2120_v37  ;;  %v641_v42 = vmul.f32 %v1837_v19, %v2120_v37  ;;  %v2153_v33 = vpop.permute.xlu1 %747 }
  0xa6   :  { %2850 = vst [vmem:[#allocation67_spill] sm:$0xff] %v2133_v3  ;;  %v459_v11 = vadd.f32 %v1953_v12, %v227_v7  ;;  %v690_v49 = vadd.f32 %v1987_v38, %v458_v21  ;;  %v242_v50 = vmul.f32 %v1827_v13, %v2133_v3  ;;  %v244_v55 = vmul.f32 %v1817_v56, %v2133_v3 }
  0xa7   :  { %v643_v8 = vmul.f32 %v1821_v58, %v2120_v37  ;;  %v692_v51 = vadd.f32 %v1990_v4, %v460_v32  ;;  %v689_v12 = vadd.f32 %v1993_v40, %v457_v45  ;;  %v241_v24 = vmul.f32 %v1833_v17, %v2133_v3 }
  0xa8   :  { %v691_v41 = vadd.f32 %v1997_v1, %v459_v11  ;;  %v474_v38 = vadd.f32 %v410_v30, %v242_v50  ;;  %v476_v46 = vadd.f32 %v412_v23, %v244_v55  ;;  %v243_v9 = vmul.f32 %v1819_v57, %v2133_v3 }
  0xa9   :  { %v222_v7 = vmul.f32 %v1825_v2, %v2076_v62  ;;  %v2159_v21 = vpop.permute.xlu0 %752  ;;  %v786_v4 = vadd.f32 %v2153_v33, %v682_v43  ;;  %v788_v40 = vadd.f32 %v2153_v33, %v684_v61  ;;  %v785_v1 = vadd.f32 %v2153_v33, %v681_v5  ;;  %v2169_v37 = vpop.permute.xlu1 %123 }
  0xaa   :  { %v787_v32 = vadd.f32 %v2153_v33, %v683_v22  ;;  %v794_v45 = vadd.f32 %v2159_v21, %v690_v49  ;;  %v796_v30 = vadd.f32 %v2159_v21, %v692_v51  ;;  %v793_v23 = vadd.f32 %v2159_v21, %v689_v12  ;;  %2851 = vst [vmem:[#allocation68_spill] sm:$0xff] %v2169_v37 }
  0xab   :  { %v795_v11 = vadd.f32 %v2159_v21, %v691_v41  ;;  %v850_v50 = vmax.f32 %v786_v4, 0.0  ;;  %v852_v55 = vmax.f32 %v788_v40, 0.0  ;;  %v849_v25 = vmax.f32 %v785_v1, 0.0 }
  0xac   :  { %v851_v20 = vmax.f32 %v787_v32, 0.0  ;;  %v858_v43 = vmax.f32 %v794_v45, 0.0  ;;  %v860_v61 = vmax.f32 %v796_v30, 0.0  ;;  %v857_v59 = vmax.f32 %v793_v23, 0.0 }
  0xad   :  { %v859_v5 = vmax.f32 %v795_v11, 0.0  ;;  %v2171_v34 = vadd.f32 %v642_v36, %v474_v38  ;;  %v473_v22 = vadd.f32 %v409_v16, %v241_v24  ;;  %v475_v49 = vadd.f32 %v411_v31, %v243_v9  ;;  %v2183_v38 = vpop.permute.xlu0 %133  ;;  %v2185_v16 = vpop.permute.xlu1 %128 }
  0xae   :  { %v230_v51 = vmul.f32 %v1825_v2, %v2101_v10  ;;  %v914_v12 = vpack.c.bf16 %v858_v43, %v850_v50  ;;  %v916_v3 = vpack.c.bf16 %v860_v61, %v852_v55  ;;  %v913_v41 = vpack.c.bf16 %v857_v59, %v849_v25  ;;  %2852 = vst [vmem:[#allocation69_spill] sm:$0xff] %v2183_v38 }
  0xaf   :  { %v915_v4 = vpack.c.bf16 %v859_v5, %v851_v20  ;;  %v2175_v40 = vadd.f32 %v644_v47, %v476_v46  ;;  %v2177_v1 = vadd.f32 %v641_v42, %v473_v22  ;;  %v250_v32 = vmul.f32 %v1827_v13, %v2169_v37  ;;  %2853 = vst [vmem:[#allocation70_spill] sm:$0xff] %v2185_v16 }
  0xb0   :  { %v252_v36 = vmul.f32 %v1817_v56, %v2169_v37  ;;  %1018 = vmatprep.subr.bf16.mxu0 %v914_v12  ;;  %1091 = vmatprep.subr.bf16.mxu1 %v916_v3  ;;  %v2187_v31 = vadd.f32 %v643_v8, %v475_v49  ;;  %v249_v59 = vmul.f32 %v1833_v17, %v2169_v37  ;;  %v2859_v49 = vld [vmem:[#allocation19_spill] sm:$0xff]  ;;  %v2860_v12 = vld [vmem:[#allocation37_spill] sm:$0xff] }
  0xb1   :  { %v251_v20 = vmul.f32 %v1819_v57, %v2169_v37  ;;  %1019 = vmatpush1.bf16.msra.mxu0 %v913_v41  ;;  %1092 = vmatpush1.bf16.msra.mxu1 %v915_v4  ;;  %v258_v25 = vmul.f32 %v1827_v13, %v2185_v16  ;;  %v482_v47 = vadd.f32 %v2000_v44, %v250_v32  ;;  %v2861_v4 = vld [vmem:[#allocation20_spill] sm:$0xff] }
  0xb2   :  { %v2198_v42 = vmul.f32 %v1827_v13, %v2183_v38  ;;  %v260_v3 = vmul.f32 %v1817_v56, %v2185_v16  ;;  %v484_v8 = vadd.f32 %v2095_v39, %v252_v36  ;;  %v257_v24 = vmul.f32 %v1833_v17, %v2185_v16  ;;  %v2223_v50 = vpop.permute.xlu1 %302  ;;  %v2862_v36 = vld [vmem:[#allocation26_spill] sm:$0xff] }
  0xb3   :  { %v481_v46 = vadd.f32 %v2003_v0, %v249_v59  ;;  %v259_v9 = vmul.f32 %v1819_v57, %v2185_v16  ;;  %v483_v45 = vadd.f32 %v2006_v63, %v251_v20  ;;  %v2211_v44 = vmul.f32 %v1817_v56, %v2183_v38  ;;  %2856 = vst [vmem:[#allocation73_spill] sm:$0xff] %v2223_v50 }
  0xb4   :  { %v2215_v30 = vmul.f32 %v1833_v17, %v2183_v38  ;;  %v454_v39 = vadd.f32 %v1869_v35, %v222_v7  ;;  %v462_v23 = vadd.f32 %v1917_v60, %v230_v51  ;;  %v224_v0 = vmul.f32 %v1849_v27, %v2076_v62  ;;  %v2858_v60 = vld [vmem:[#allocation18_spill] sm:$0xff] }
  0xb5   :  { %2854 = vst [vmem:[#allocation71_spill] sm:$0xff] %v2211_v44  ;;  %v232_v11 = vmul.f32 %v1849_v27, %v2101_v10  ;;  %v2227_v63 = vmul.f32 %v1819_v57, %v2183_v38  ;;  %v221_v55 = vmul.f32 %v1851_v28, %v2076_v62  ;;  %v229_v35 = vmul.f32 %v1851_v28, %v2101_v10  ;;  %v2863_v27 = vld [vmem:[#allocation21_spill] sm:$0xff] }
  0xb6   :  { %2855 = vst [vmem:[#allocation72_spill] sm:$0xff] %v2215_v30  ;;  %v223_v7 = vmul.f32 %v2858_v60, %v2076_v62  ;;  %v426_v43 = vmul.f32 %v1829_v14, %v2223_v50  ;;  %v428_v61 = vmul.f32 %v1811_v52, %v2223_v50  ;;  %v425_v5 = vmul.f32 %v1835_v18, %v2223_v50  ;;  %v2864_v30 = vld [vmem:[#allocation38_spill] sm:$0xff] }
  0xb7   :  { %2857 = vst [vmem:[#allocation74_spill] sm:$0xff] %v2227_v63  ;;  %v427_v22 = vmul.f32 %v1815_v54, %v2223_v50  ;;  %v686_v51 = vadd.f32 %v2859_v49, %v454_v39  ;;  %v694_v41 = vadd.f32 %v2860_v12, %v462_v23  ;;  %v456_v32 = vadd.f32 %v2861_v4, %v224_v0  ;;  %v2251_v44 = vpop.permute.xlu1 %530  ;;  %v2865_v39 = vld [vmem:[#allocation33_spill] sm:$0xff]  ;;  %v2866_v0 = vld [vmem:[#allocation34_spill] sm:$0xff]  ;;  %v2275_v4 = vpop.permute.xlu0 %767 }
  0xb8   :  { %v464_v62 = vadd.f32 %v2862_v36, %v232_v11  ;;  %v490_v59 = vadd.f32 %v426_v43, %v258_v25  ;;  %v492_v20 = vadd.f32 %v428_v61, %v260_v3  ;;  %v489_v38 = vadd.f32 %v425_v5, %v257_v24  ;;  %v2867_v25 = vld [vmem:[#allocation35_spill] sm:$0xff]  ;;  %v2868_v24 = vld [vmem:[#allocation36_spill] sm:$0xff]  ;;  %2869 = vst [vmem:[#allocation18_spill] sm:$0xff] %v2275_v4 }
  0xb9   :  { %v491_v16 = vadd.f32 %v427_v22, %v259_v9  ;;  %v790_v37 = vadd.f32 %v2153_v33, %v686_v51  ;;  %v798_v28 = vadd.f32 %v2159_v21, %v694_v41  ;;  %v688_v63 = vadd.f32 %v2863_v27, %v456_v32 }
  0xba   :  { %v696_v50 = vadd.f32 %v2864_v30, %v464_v62  ;;  %v2254_v23 = vadd.f32 %v2865_v39, %v490_v59  ;;  %v2257_v49 = vadd.f32 %v2866_v0, %v492_v20  ;;  %v2260_v3 = vadd.f32 %v2867_v25, %v489_v38  ;;  %v2870_v62 = vld [vmem:[#allocation22_spill] sm:$0xff] }
  0xbb   :  { %v2263_v9 = vadd.f32 %v2868_v24, %v491_v16  ;;  %v650_v11 = vmul.f32 %v1831_v15, %v2251_v44  ;;  %v652_v27 = vmul.f32 %v1813_v53, %v2251_v44  ;;  %v649_v30 = vmul.f32 %v1837_v19, %v2251_v44 }
  0xbc   :  { %v651_v43 = vmul.f32 %v1821_v58, %v2251_v44  ;;  %v854_v61 = vmax.f32 %v790_v37, 0.0  ;;  %v862_v5 = vmax.f32 %v798_v28, 0.0  ;;  %v792_v38 = vadd.f32 %v2153_v33, %v688_v63  ;;  %v2282_v37 = vpop.permute.xlu1 %757 }
  0xbd   :  { %v800_v22 = vadd.f32 %v2159_v21, %v696_v50  ;;  %v714_v16 = vadd.f32 %v650_v11, %v482_v47  ;;  %v716_v51 = vadd.f32 %v652_v27, %v484_v8  ;;  %v713_v12 = vadd.f32 %v649_v30, %v481_v46 }
  0xbe   :  { %v715_v41 = vadd.f32 %v651_v43, %v483_v45  ;;  %v2277_v32 = vpack.c.bf16 %v862_v5, %v854_v61  ;;  %v856_v36 = vmax.f32 %v792_v38, 0.0  ;;  %v453_v59 = vadd.f32 %v2870_v62, %v221_v55  ;;  %v2873_v5 = vld [vmem:[#allocation24_spill] sm:$0xff] }
  0xbf   :  { %v231_v20 = vmul.f32 %v2858_v60, %v2101_v10  ;;  %v2285_v28 = vadd.f32 %v2275_v4, %v714_v16  ;;  %v2288_v47 = vadd.f32 %v2275_v4, %v716_v51  ;;  %v2291_v8 = vadd.f32 %v2275_v4, %v713_v12  ;;  %v2875_v62 = vld [vmem:[#allocation28_spill] sm:$0xff] }
  0xc0   :  { %v864_v46 = vmax.f32 %v800_v22, 0.0  ;;  %v802_v45 = vadd.f32 %v2282_v37, %v2090_v29  ;;  %v804_v50 = vadd.f32 %v2282_v37, %v2104_v26  ;;  %v801_v10 = vadd.f32 %v2282_v37, %v2109_v6  ;;  %v2307_v26 = vpop.permute.xlu1 %762  ;;  %v2871_v6 = vld [vmem:[#allocation27_spill] sm:$0xff] }
  0xc1   :  { %v803_v63 = vadd.f32 %v2282_v37, %v2118_v48  ;;  %v2305_v25 = vadd.f32 %v2275_v4, %v715_v41  ;;  %v461_v43 = vadd.f32 %v2871_v6, %v229_v35  ;;  %v2872_v48 = vld [vmem:[#allocation23_spill] sm:$0xff]  ;;  %v455_v38 = vadd.f32 %v2873_v5, %v223_v7  ;;  %v2878_v6 = vld [vmem:[#allocation40_spill] sm:$0xff] }
  0xc2   :  { %v866_v24 = vmax.f32 %v802_v45, 0.0  ;;  %v868_v29 = vmax.f32 %v804_v50, 0.0  ;;  %v865_v11 = vmax.f32 %v801_v10, 0.0  ;;  %v2309_v30 = vpack.c.bf16 %v864_v46, %v856_v36  ;;  %v2874_v41 = vld [vmem:[#allocation39_spill] sm:$0xff]  ;;  %v2876_v46 = vld [vmem:[#allocation25_spill] sm:$0xff] }
  0xc3   :  { %v867_v27 = vmax.f32 %v803_v63, 0.0  ;;  %v685_v61 = vadd.f32 %v2872_v48, %v453_v59  ;;  %v810_v22 = vadd.f32 %v2307_v26, %v2171_v34  ;;  %v812_v16 = vadd.f32 %v2307_v26, %v2175_v40 }
  0xc4   :  { %v809_v51 = vadd.f32 %v2307_v26, %v2177_v1  ;;  %v811_v12 = vadd.f32 %v2307_v26, %v2187_v31  ;;  %v693_v36 = vadd.f32 %v2874_v41, %v461_v43  ;;  %v463_v59 = vadd.f32 %v2875_v62, %v231_v20  ;;  %v2326_v63 = vpop.permute.xlu1 %138  ;;  %v2884_v62 = vld [vmem:[#allocation56_spill] sm:$0xff] }
  0xc5   :  { %v789_v35 = vadd.f32 %v2153_v33, %v685_v61  ;;  %v687_v7 = vadd.f32 %v2876_v46, %v455_v38  ;;  %v874_v45 = vmax.f32 %v810_v22, 0.0  ;;  %v876_v50 = vmax.f32 %v812_v16, 0.0  ;;  %2877 = vst [vmem:[#allocation19_spill] sm:$0xff] %v2326_v63 }
  0xc6   :  { %v873_v34 = vmax.f32 %v809_v51, 0.0  ;;  %v875_v10 = vmax.f32 %v811_v12, 0.0  ;;  %v797_v40 = vadd.f32 %v2159_v21, %v693_v36  ;;  %v695_v48 = vadd.f32 %v2878_v6, %v463_v59  ;;  %v2881_v12 = vld [vmem:[#allocation54_spill] sm:$0xff]  ;;  %v2882_v36 = vld [vmem:[#allocation55_spill] sm:$0xff] }
  0xc7   :  { %v853_v1 = vmax.f32 %v789_v35, 0.0  ;;  %v791_v31 = vadd.f32 %v2153_v33, %v687_v7  ;;  %v922_v43 = vpack.c.bf16 %v874_v45, %v866_v24  ;;  %v924_v5 = vpack.c.bf16 %v876_v50, %v868_v29  ;;  %v2879_v29 = vld [vmem:[#allocation67_spill] sm:$0xff]  ;;  %v2885_v7 = vld [vmem:[#allocation65_spill] sm:$0xff]  ;;  %v2886_v45 = vld [vmem:[#allocation8_spill] sm:$0xff] }
  0xc8   :  { %v921_v61 = vpack.c.bf16 %v873_v34, %v865_v11  ;;  %v923_v41 = vpack.c.bf16 %v875_v10, %v867_v27  ;;  %v274_v20 = vmul.f32 %v1827_v13, %v2326_v63  ;;  %v276_v38 = vmul.f32 %v1817_v56, %v2326_v63  ;;  %v2880_v56 = vld [vmem:[#allocation53_spill] sm:$0xff] }
  0xc9   :  { %v273_v22 = vmul.f32 %v1833_v17, %v2326_v63  ;;  %v275_v16 = vmul.f32 %v1819_v57, %v2326_v63  ;;  %1020 = vmatprep.subr.bf16.mxu0 %v922_v43  ;;  %1093 = vmatprep.subr.bf16.mxu1 %v924_v5  ;;  %v861_v51 = vmax.f32 %v797_v40, 0.0  ;;  %v799_v33 = vadd.f32 %v2159_v21, %v695_v48  ;;  %v2346_v57 = vpop.permute.xlu1 %306 }
  0xca   :  { %v855_v24 = vmax.f32 %v791_v31, 0.0  ;;  %v246_v11 = vmul.f32 %v1825_v2, %v2879_v29  ;;  %1021 = vmatpush1.bf16.msra.mxu0 %v921_v61  ;;  %1094 = vmatpush1.bf16.msra.mxu1 %v923_v41  ;;  %v506_v27 = vadd.f32 %v2880_v56, %v274_v20  ;;  %v508_v17 = vadd.f32 %v2881_v12, %v276_v38  ;;  %v2889_v31 = vld [vmem:[#allocation61_spill] sm:$0xff]  ;;  %v2890_v61 = vld [vmem:[#allocation66_spill] sm:$0xff]  ;;  %v2892_v38 = vld [vmem:[#allocation71_spill] sm:$0xff] }
  0xcb   :  { %v505_v35 = vadd.f32 %v2882_v36, %v273_v22  ;;  %2883 = vst [vmem:[#allocation37_spill] sm:$0xff] %v2346_v57  ;;  %v507_v59 = vadd.f32 %v2884_v62, %v275_v16  ;;  %v2349_v46 = vpack.c.bf16 %v861_v51, %v853_v1  ;;  %v863_v21 = vmax.f32 %v799_v33, 0.0  ;;  %v2888_v1 = vld [vmem:[#allocation45_spill] sm:$0xff]  ;;  %v2891_v41 = vld [vmem:[#allocation10_spill] sm:$0xff] }
  0xcc   :  { %v414_v50 = vmul.f32 %v2886_v45, %v2885_v7  ;;  %v434_v34 = vmul.f32 %v1829_v14, %v2346_v57  ;;  %v436_v10 = vmul.f32 %v1811_v52, %v2346_v57  ;;  %v433_v40 = vmul.f32 %v1835_v18, %v2346_v57  ;;  %v2893_v52 = vld [vmem:[#allocation72_spill] sm:$0xff]  ;;  %v2894_v51 = vld [vmem:[#allocation74_spill] sm:$0xff]  ;;  %v2895_v33 = vld [vmem:[#allocation29_spill] sm:$0xff] }
  0xcd   :  { %v435_v6 = vmul.f32 %v1815_v54, %v2346_v57  ;;  %v2361_v48 = vpack.c.bf16 %v863_v21, %v855_v24  ;;  %v470_v43 = vadd.f32 %v2889_v31, %v2888_v1  ;;  %v646_v20 = vmul.f32 %v2891_v41, %v2890_v61  ;;  %v2896_v24 = vld [vmem:[#allocation14_spill] sm:$0xff]  ;;  %v2897_v36 = vld [vmem:[#allocation9_spill] sm:$0xff]  ;;  %v2903_v1 = vld [vmem:[#allocation12_spill] sm:$0xff] }
  0xce   :  { %v478_v5 = vadd.f32 %v414_v50, %v246_v11  ;;  %v498_v14 = vadd.f32 %v434_v34, %v2198_v42  ;;  %v500_v22 = vadd.f32 %v436_v10, %v2892_v38  ;;  %v497_v16 = vadd.f32 %v433_v40, %v2893_v52  ;;  %v2376_v62 = vpop.permute.xlu1 %538  ;;  %v2899_v21 = vld [vmem:[#allocation46_spill] sm:$0xff]  ;;  %v2901_v34 = vld [vmem:[#allocation11_spill] sm:$0xff] }
  0xcf   :  { %2887 = vst [vmem:[#allocation20_spill] sm:$0xff] %v2361_v48  ;;  %v499_v18 = vadd.f32 %v435_v6, %v2894_v51  ;;  %v702_v56 = vadd.f32 %v2895_v33, %v470_v43  ;;  %v248_v12 = vmul.f32 %v2896_v24, %v2879_v29  ;;  %v416_v11 = vmul.f32 %v2897_v36, %v2885_v7  ;;  %v2900_v50 = vld [vmem:[#allocation62_spill] sm:$0xff]  ;;  %v2902_v40 = vld [vmem:[#allocation15_spill] sm:$0xff] }
  0xd0   :  { %v710_v54 = vadd.f32 %v646_v20, %v478_v5  ;;  %2898 = vst [vmem:[#allocation26_spill] sm:$0xff] %v2376_v62  ;;  %v472_v42 = vadd.f32 %v2900_v50, %v2899_v21  ;;  %v648_v10 = vmul.f32 %v2901_v34, %v2890_v61  ;;  %v245_v6 = vmul.f32 %v2902_v40, %v2879_v29  ;;  %v2904_v21 = vld [vmem:[#allocation30_spill] sm:$0xff] }
  0xd1   :  { %v413_v31 = vmul.f32 %v2903_v1, %v2885_v7  ;;  %v666_v43 = vmul.f32 %v1831_v15, %v2376_v62  ;;  %v668_v5 = vmul.f32 %v1813_v53, %v2376_v62  ;;  %v665_v20 = vmul.f32 %v1837_v19, %v2376_v62 }
  0xd2   :  { %v667_v38 = vmul.f32 %v1821_v58, %v2376_v62  ;;  %v806_v52 = vadd.f32 %v2282_v37, %v702_v56  ;;  %v814_v51 = vadd.f32 %v2307_v26, %v710_v54  ;;  %v480_v33 = vadd.f32 %v416_v11, %v248_v12  ;;  %v2397_v57 = vpop.permute.xlu1 %542  ;;  %v2905_v12 = vld [vmem:[#allocation47_spill] sm:$0xff] }
  0xd3   :  { %v704_v50 = vadd.f32 %v2904_v21, %v472_v42  ;;  %v730_v13 = vadd.f32 %v666_v43, %v498_v14  ;;  %v732_v0 = vadd.f32 %v668_v5, %v500_v22  ;;  %v729_v39 = vadd.f32 %v665_v20, %v497_v16  ;;  %v2906_v11 = vld [vmem:[#allocation63_spill] sm:$0xff]  ;;  %v2413_v20 = vpop.permute.xlu0 %782 }
  0xd4   :  { %v731_v55 = vadd.f32 %v667_v38, %v499_v18  ;;  %v870_v63 = vmax.f32 %v806_v52, 0.0  ;;  %v878_v1 = vmax.f32 %v814_v51, 0.0  ;;  %v712_v4 = vadd.f32 %v648_v10, %v480_v33 }
  0xd5   :  { %v808_v48 = vadd.f32 %v2282_v37, %v704_v50  ;;  %v674_v62 = vmul.f32 %v1831_v15, %v2397_v57  ;;  %v676_v56 = vmul.f32 %v1813_v53, %v2397_v57  ;;  %v673_v54 = vmul.f32 %v1837_v19, %v2397_v57  ;;  %v2907_v19 = vld [vmem:[#allocation16_spill] sm:$0xff] }
  0xd6   :  { %v675_v14 = vmul.f32 %v1821_v58, %v2397_v57  ;;  %v2408_v22 = vpack.c.bf16 %v878_v1, %v870_v63  ;;  %v816_v16 = vadd.f32 %v2307_v26, %v712_v4  ;;  %v469_v42 = vadd.f32 %v2906_v11, %v2905_v12  ;;  %v2908_v58 = vld [vmem:[#allocation31_spill] sm:$0xff] }
  0xd7   :  { %v872_v18 = vmax.f32 %v808_v48, 0.0  ;;  %v738_v10 = vadd.f32 %v674_v62, %v506_v27  ;;  %v740_v43 = vadd.f32 %v676_v56, %v508_v17  ;;  %v737_v15 = vadd.f32 %v673_v54, %v505_v35  ;;  %v2418_v1 = vpop.permute.xlu1 %772 }
  0xd8   :  { %v739_v5 = vadd.f32 %v675_v14, %v507_v59  ;;  %v880_v53 = vmax.f32 %v816_v16, 0.0  ;;  %v477_v38 = vadd.f32 %v413_v31, %v245_v6  ;;  %v645_v52 = vmul.f32 %v2907_v19, %v2890_v61 }
  0xd9   :  { %v701_v63 = vadd.f32 %v2908_v58, %v469_v42  ;;  %v842_v4 = vadd.f32 %v2413_v20, %v738_v10  ;;  %v844_v48 = vadd.f32 %v2413_v20, %v740_v43  ;;  %v841_v27 = vadd.f32 %v2413_v20, %v737_v15 }
  0xda   :  { %v843_v17 = vadd.f32 %v2413_v20, %v739_v5  ;;  %v826_v35 = vadd.f32 %v2418_v1, %v2254_v23  ;;  %v828_v59 = vadd.f32 %v2418_v1, %v2257_v49  ;;  %v825_v62 = vadd.f32 %v2418_v1, %v2260_v3 }
  0xdb   :  { %v827_v6 = vadd.f32 %v2418_v1, %v2263_v9  ;;  %v906_v31 = vmax.f32 %v842_v4, 0.0  ;;  %v908_v51 = vmax.f32 %v844_v48, 0.0  ;;  %v905_v33 = vmax.f32 %v841_v27, 0.0  ;;  %v2432_v16 = vpop.permute.xlu1 %777  ;;  %v2915_v4 = vld [vmem:[#allocation64_spill] sm:$0xff] }
  0xdc   :  { %v907_v21 = vmax.f32 %v843_v17, 0.0  ;;  %v890_v50 = vmax.f32 %v826_v35, 0.0  ;;  %v892_v56 = vmax.f32 %v828_v59, 0.0  ;;  %v889_v54 = vmax.f32 %v825_v62, 0.0  ;;  %v2917_v59 = vld [vmem:[#allocation32_spill] sm:$0xff] }
  0xdd   :  { %v891_v14 = vmax.f32 %v827_v6, 0.0  ;;  %v2434_v23 = vpack.c.bf16 %v880_v53, %v872_v18  ;;  %v709_v12 = vadd.f32 %v645_v52, %v477_v38  ;;  %v805_v49 = vadd.f32 %v2282_v37, %v701_v63  ;;  %v2913_v52 = vld [vmem:[#allocation13_spill] sm:$0xff]  ;;  %v2914_v63 = vld [vmem:[#allocation48_spill] sm:$0xff] }
  0xde   :  { %v247_v3 = vmul.f32 %v2858_v60, %v2879_v29  ;;  %v2909_v9 = vmax.f32 %v2285_v28, 0.0  ;;  %v2910_v42 = vmax.f32 %v2288_v47, 0.0  ;;  %v2911_v43 = vmax.f32 %v2291_v8, 0.0 }
  0xdf   :  { %v2912_v5 = vmax.f32 %v2305_v25, 0.0  ;;  %v834_v18 = vadd.f32 %v2432_v16, %v730_v13  ;;  %v836_v53 = vadd.f32 %v2432_v16, %v732_v0  ;;  %v833_v38 = vadd.f32 %v2432_v16, %v729_v39 }
  0xe0   :  { %v930_v11 = vpack.c.bf16 %v890_v50, %v2909_v9  ;;  %v932_v10 = vpack.c.bf16 %v892_v56, %v2910_v42  ;;  %v929_v15 = vpack.c.bf16 %v889_v54, %v2911_v43  ;;  %v835_v29 = vadd.f32 %v2432_v16, %v731_v55  ;;  %v2916_v55 = vld [vmem:[#allocation17_spill] sm:$0xff] }
  0xe1   :  { %v931_v58 = vpack.c.bf16 %v891_v14, %v2912_v5  ;;  %v813_v28 = vadd.f32 %v2307_v26, %v709_v12  ;;  %v869_v47 = vmax.f32 %v805_v49, 0.0  ;;  %v415_v8 = vmul.f32 %v2913_v52, %v2885_v7  ;;  %v2918_v49 = vld [vmem:[#allocation68_spill] sm:$0xff] }
  0xe2   :  { %1022 = vmatprep.subr.bf16.mxu0 %v930_v11  ;;  %1095 = vmatprep.subr.bf16.mxu1 %v932_v10  ;;  %v471_v25 = vadd.f32 %v2915_v4, %v2914_v63  ;;  %v898_v13 = vmax.f32 %v834_v18, 0.0  ;;  %v900_v48 = vmax.f32 %v836_v53, 0.0  ;;  %v897_v0 = vmax.f32 %v833_v38, 0.0  ;;  %v2921_v11 = vld [vmem:[#allocation49_spill] sm:$0xff]  ;;  %v2925_v4 = vld [vmem:[#allocation18_spill] sm:$0xff] }
  0xe3   :  { %1023 = vmatpush1.bf16.msra.mxu0 %v929_v15  ;;  %1096 = vmatpush1.bf16.msra.mxu1 %v931_v58  ;;  %v899_v27 = vmax.f32 %v835_v29, 0.0  ;;  %v877_v39 = vmax.f32 %v813_v28, 0.0  ;;  %v479_v17 = vadd.f32 %v415_v8, %v247_v3  ;;  %v647_v35 = vmul.f32 %v2916_v55, %v2890_v61  ;;  %v2465_v3 = vld [vmem:[%s2738_s2] sm:$0xff]   ;;  %v2919_v61 = vld [vmem:[#allocation70_spill] sm:$0xff] }
  0xe4   :  { %v703_v62 = vadd.f32 %v2917_v59, %v471_v25  ;;  %v938_v6 = vpack.c.bf16 %v906_v31, %v898_v13  ;;  %v940_v50 = vpack.c.bf16 %v908_v51, %v900_v48  ;;  %v937_v56 = vpack.c.bf16 %v905_v33, %v897_v0  ;;  %v2920_v51 = vld [vmem:[#allocation73_spill] sm:$0xff]  ;;  %v2924_v8 = vld [vmem:[#allocation20_spill] sm:$0xff]  ;;  %v2926_v0 = vld [vmem:[#allocation42_spill] sm:$0xff] }
  0xe5   :  { %v939_v7 = vpack.c.bf16 %v907_v21, %v899_v27  ;;  %v925_v54 = vpack.c.bf16 %v877_v39, %v869_v47  ;;  %v711_v14 = vadd.f32 %v647_v35, %v479_v17  ;;  %v254_v9 = vmul.f32 %v1825_v2, %v2918_v49  ;;  %v2928_v59 = vld [vmem:[#allocation12_spill] sm:$0xff] }
  0xe6   :  { %v807_v12 = vadd.f32 %v2282_v37, %v703_v62  ;;  %1024 = vmatprep.subr.bf16.mxu0 %v938_v6  ;;  %1097 = vmatprep.subr.bf16.mxu1 %v940_v50  ;;  %v262_v31 = vmul.f32 %v1825_v2, %v2919_v61  ;;  %v430_v33 = vmul.f32 %v2886_v45, %v2920_v51  ;;  %v2927_v35 = vmov 0  }
  0xe7   :  { %v654_v21 = vmul.f32 %v2891_v41, %v2251_v44  ;;  %1025 = vmatpush1.bf16.msra.mxu0 %v937_v56  ;;  %1098 = vmatpush1.bf16.msra.mxu1 %v939_v7  ;;  %v815_v37 = vadd.f32 %v2307_v26, %v711_v14  ;;  %v486_v42 = vadd.f32 %v2921_v11, %v254_v9  ;;  %v2922_v26 = vld [vmem:[#allocation50_spill] sm:$0xff]  ;;  %v2512_v56 = vld [vmem:[%s2738_s2 + $0x8] sm:$0xff]  }
  0xe8   :  { %v256_v10 = vmul.f32 %v2896_v24, %v2918_v49  ;;  %1164 = vmatprep.subr.bf16.mxu0 %v2277_v32  ;;  %1237 = vmatprep.subr.bf16.mxu1 %v2309_v30  ;;  %v871_v43 = vmax.f32 %v807_v12, 0.0  ;;  %v494_v15 = vadd.f32 %v430_v33, %v262_v31  ;;  %v264_v5 = vmul.f32 %v2896_v24, %v2919_v61  ;;  %v2923_v32 = vld [vmem:[#allocation41_spill] sm:$0xff] }
  0xe9   :  { %v432_v58 = vmul.f32 %v2897_v36, %v2920_v51  ;;  %v879_v18 = vmax.f32 %v815_v37, 0.0  ;;  %v718_v53 = vadd.f32 %v654_v21, %v486_v42  ;;  %v656_v29 = vmul.f32 %v2901_v34, %v2251_v44  ;;  %v2930_v42 = vld [vmem:[#allocation52_spill] sm:$0xff] }
  0xea   :  { %v488_v38 = vadd.f32 %v2922_v26, %v256_v10  ;;  %1614 = vmatmul.mubr.msk.bf16.vlgmr.msra.gmra.mrb[0].mxu0 %vm1005_vm2, %v2465_v3  ;;  %1618 = vmatmul.mubr.msk.bf16.vlgmr.msra.gmra.mrb[0].mxu1 %vm1005_vm2, %v2465_v3  ;;  %v726_v30 = vadd.f32 %v2923_v32, %v494_v15  ;;  %v253_v47 = vmul.f32 %v2902_v40, %v2918_v49  ;;  %v2935_v32 = vld [vmem:[#allocation37_spill] sm:$0xff] }
  0xeb   :  { %v496_v28 = vadd.f32 %v432_v58, %v264_v5  ;;  %1165 = vmatpush1.bf16.msra.mxu0 %v2349_v46  ;;  %1238 = vmatpush1.bf16.msra.mxu1 %v2924_v8  ;;  %v927_v63 = vpack.c.bf16 %v879_v18, %v871_v43  ;;  %v822_v25 = vadd.f32 %v2925_v4, %v718_v53  ;;  %v2931_v43 = vld [vmem:[#allocation43_spill] sm:$0xff] }
  0xec   :  { %v720_v13 = vadd.f32 %v656_v29, %v488_v38  ;;  %1166 = vmatprep.subr.bf16.mxu0 %v2408_v22  ;;  %1239 = vmatprep.subr.bf16.mxu1 %v2434_v23  ;;  %v830_v48 = vadd.f32 %v2418_v1, %v726_v30  ;;  %v261_v39 = vmul.f32 %v2902_v40, %v2919_v61  ;;  %v2929_v22 = vld [vmem:[#allocation51_spill] sm:$0xff] }
  0xed   :  { %v728_v27 = vadd.f32 %v2926_v0, %v496_v28  ;;  %v886_v17 = vmax.f32 %v822_v25, 0.0  ;;  %1060 = vmatprep.mubr.bf16.mxu0 %v2927_v35  ;;  %1133 = vmatprep.mubr.bf16.mxu1 %v2927_v35  ;;  %v429_v62 = vmul.f32 %v2928_v59, %v2920_v51  ;;  %v485_v6 = vadd.f32 %v2929_v22, %v253_v47  ;;  %v2936_v47 = vld [vmem:[#allocation57_spill] sm:$0xff] }
  0xee   :  { %v824_v46 = vadd.f32 %v2925_v4, %v720_v13  ;;  %v894_v23 = vmax.f32 %v830_v48, 0.0  ;;  %v653_v7 = vmul.f32 %v2907_v19, %v2251_v44  ;;  %v255_v14 = vmul.f32 %v2858_v60, %v2918_v49  ;;  %v2932_v49 = vld [vmem:[#allocation69_spill] sm:$0xff] }
  0xef   :  { %v832_v50 = vadd.f32 %v2418_v1, %v728_v27  ;;  %1167 = vmatpush1.bf16.msra.mxu0 %v925_v54  ;;  %1240 = vmatpush1.bf16.msra.mxu1 %v927_v63  ;;  %v493_v9 = vadd.f32 %v429_v62, %v261_v39  ;;  %v263_v31 = vmul.f32 %v2858_v60, %v2919_v61  ;;  %v2937_v63 = vld [vmem:[#allocation26_spill] sm:$0xff] }
  0xf0   :  { %v888_v12 = vmax.f32 %v824_v46, 0.0  ;;  %v431_v33 = vmul.f32 %v2913_v52, %v2920_v51  ;;  %v934_v21 = vpack.c.bf16 %v894_v23, %v886_v17  ;;  %v717_v11 = vadd.f32 %v653_v7, %v485_v6  ;;  %v2933_v51 = vld [vmem:[#allocation19_spill] sm:$0xff]  ;;  %v2557_v46 = vld [vmem:[%s2738_s2 + $0x10] sm:$0xff]  }
  0xf1   :  { %v896_v37 = vmax.f32 %v832_v50, 0.0  ;;  %v487_v10 = vadd.f32 %v2930_v42, %v255_v14  ;;  %v725_v15 = vadd.f32 %v2931_v43, %v493_v9  ;;  %v655_v54 = vmul.f32 %v2916_v55, %v2251_v44  ;;  %v2934_v44 = vld [vmem:[#allocation44_spill] sm:$0xff]  ;;  %v2938_v50 = vld [vmem:[#allocation58_spill] sm:$0xff] }
  0xf2   :  { %v495_v5 = vadd.f32 %v431_v33, %v263_v31  ;;  %v270_v58 = vmul.f32 %v1825_v2, %v2932_v49  ;;  %1168 = vmatprep.subr.bf16.mxu0 %v934_v21  ;;  %1615 = vmatmul.mubr.msk.bf16.gmra.mrb[4].mxu0 %vm1005_vm2, %v2512_v56  ;;  %v821_v61 = vadd.f32 %v2925_v4, %v717_v11 }
  0xf3   :  { %v936_v18 = vpack.c.bf16 %v896_v37, %v888_v12  ;;  %v278_v53 = vmul.f32 %v1825_v2, %v2933_v51  ;;  %1619 = vmatmul.mubr.msk.bf16.gmra.mrb[4].mxu1 %vm1005_vm2, %v2512_v56  ;;  %v829_v26 = vadd.f32 %v2418_v1, %v725_v15  ;;  %v719_v38 = vadd.f32 %v655_v54, %v487_v10  ;;  %v2939_v15 = vld [vmem:[#allocation59_spill] sm:$0xff] }
  0xf4   :  { %v727_v29 = vadd.f32 %v2934_v44, %v495_v5  ;;  %v438_v30 = vmul.f32 %v2886_v45, %v2935_v32  ;;  %v885_v28 = vmax.f32 %v821_v61, 0.0  ;;  %v670_v25 = vmul.f32 %v2891_v41, %v2937_v63  ;;  %1070 = vmatprep.mubr.bf16.mxu0 %v2927_v35  ;;  %1143 = vmatprep.mubr.bf16.mxu1 %v2927_v35 }
  0xf5   :  { %1241 = vmatprep.subr.bf16.mxu1 %v936_v18  ;;  %v510_v8 = vadd.f32 %v2936_v47, %v278_v53  ;;  %v678_v2 = vmul.f32 %v2891_v41, %v2397_v57  ;;  %v893_v13 = vmax.f32 %v829_v26, 0.0  ;;  %v823_v48 = vadd.f32 %v2925_v4, %v719_v38  ;;  %v1655_v38 = vld [vmem:[%s2738_s2 + $0x18] sm:$0xff]  }
  0xf6   :  { %v831_v0 = vadd.f32 %v2418_v1, %v727_v29  ;;  %v502_v27 = vadd.f32 %v438_v30, %v270_v58  ;;  %v272_v39 = vmul.f32 %v2896_v24, %v2932_v49  ;;  %v280_v17 = vmul.f32 %v2896_v24, %v2933_v51  ;;  %v2940_v30 = vld [vmem:[#allocation60_spill] sm:$0xff] }
  0xf7   :  { %v742_v45 = vadd.f32 %v678_v2, %v510_v8  ;;  %v440_v41 = vmul.f32 %v2897_v36, %v2935_v32  ;;  %v933_v4 = vpack.c.bf16 %v893_v13, %v885_v28  ;;  %v887_v1 = vmax.f32 %v823_v48, 0.0 }
  0xf8   :  { %v895_v62 = vmax.f32 %v831_v0, 0.0  ;;  %v734_v22 = vadd.f32 %v670_v25, %v502_v27  ;;  %v512_v7 = vadd.f32 %v2938_v50, %v280_v17  ;;  %v672_v24 = vmul.f32 %v2901_v34, %v2937_v63 }
  0xf9   :  { %v846_v6 = vadd.f32 %v2413_v20, %v742_v45  ;;  %v504_v23 = vadd.f32 %v440_v41, %v272_v39  ;;  %1169 = vmatpush1.bf16.msra.mxu0 %v933_v4  ;;  %v680_v12 = vmul.f32 %v2901_v34, %v2397_v57  ;;  %v269_v9 = vmul.f32 %v2902_v40, %v2932_v49 }
  0xfa   :  { %v935_v14 = vpack.c.bf16 %v895_v62, %v887_v1  ;;  %v838_v36 = vadd.f32 %v2432_v16, %v734_v22  ;;  %v277_v21 = vmul.f32 %v2902_v40, %v2933_v51  ;;  %v437_v37 = vmul.f32 %v2928_v59, %v2935_v32  ;;  %1616 = vmatmul.mubr.msk.bf16.gmra.mrb[8].mxu0 %vm1005_vm2, %v2557_v46 }
  0xfb   :  { %v910_v31 = vmax.f32 %v846_v6, 0.0  ;;  %v736_v33 = vadd.f32 %v672_v24, %v504_v23  ;;  %v744_v42 = vadd.f32 %v680_v12, %v512_v7  ;;  %v669_v34 = vmul.f32 %v2907_v19, %v2937_v63  ;;  %1080 = vmatprep.mubr.bf16.mxu0 %v2927_v35  ;;  %1620 = vmatmul.mubr.msk.bf16.gmra.mrb[8].mxu1 %vm1005_vm2, %v2557_v46 }
  0xfc   :  { %1242 = vmatpush1.bf16.msra.mxu1 %v935_v14  ;;  %v902_v11 = vmax.f32 %v838_v36, 0.0  ;;  %v677_v10 = vmul.f32 %v2907_v19, %v2397_v57  ;;  %v501_v40 = vadd.f32 %v437_v37, %v269_v9  ;;  %v509_v5 = vadd.f32 %v2939_v15, %v277_v21  ;;  %1153 = vmatprep.mubr.bf16.mxu1 %v2927_v35 }
  0xfd   :  { %v840_v43 = vadd.f32 %v2432_v16, %v736_v33  ;;  %v271_v59 = vmul.f32 %v2858_v60, %v2932_v49  ;;  %v848_v58 = vadd.f32 %v2413_v20, %v744_v42  ;;  %v279_v18 = vmul.f32 %v2858_v60, %v2933_v51 }
  0xfe   :  { %v942_v54 = vpack.c.bf16 %v910_v31, %v902_v11  ;;  %v439_v19 = vmul.f32 %v2913_v52, %v2935_v32  ;;  %v733_v53 = vadd.f32 %v669_v34, %v501_v40  ;;  %v741_v26 = vadd.f32 %v677_v10, %v509_v5 }
  0xff   :  { %v904_v61 = vmax.f32 %v840_v43, 0.0  ;;  %v671_v49 = vmul.f32 %v2916_v55, %v2937_v63  ;;  %v912_v44 = vmax.f32 %v848_v58, 0.0  ;;  %v511_v60 = vadd.f32 %v2940_v30, %v279_v18 }
 0x100   :  { %1170 = vmatprep.subr.bf16.mxu0 %v942_v54  ;;  %v503_v29 = vadd.f32 %v439_v19, %v271_v59  ;;  %v679_v52 = vmul.f32 %v2916_v55, %v2397_v57  ;;  %v837_v51 = vadd.f32 %v2432_v16, %v733_v53  ;;  %v845_v32 = vadd.f32 %v2413_v20, %v741_v26 }
 0x101   :  { %v944_v28 = vpack.c.bf16 %v912_v44, %v904_v61 }
 0x102   :  { %v735_v47 = vadd.f32 %v671_v49, %v503_v29  ;;  %v743_v8 = vadd.f32 %v679_v52, %v511_v60  ;;  %v901_v63 = vmax.f32 %v837_v51, 0.0  ;;  %v909_v25 = vmax.f32 %v845_v32, 0.0  ;;  %1617 = vmatmul.mubr.msk.bf16.gmra.mrb[12].mxu0 %vm1005_vm2, %v1655_v38 }
 0x103   :  { %1243 = vmatprep.subr.bf16.mxu1 %v944_v28  ;;  %1196 = vmatprep.mubr.bf16.mxu0 %v2927_v35 }
 0x104   :  { %v839_v2 = vadd.f32 %v2432_v16, %v735_v47  ;;  %v847_v13 = vadd.f32 %v2413_v20, %v743_v8  ;;  %v941_v48 = vpack.c.bf16 %v909_v25, %v901_v63  ;;  %1621 = vmatmul.mubr.msk.bf16.gmra.mrb[12].mxu1 %vm1005_vm2, %v1655_v38  ;;  %v2629_v20 = vpop.permute.xlu0 %952  ;;  %v2631_v16 = vpop.permute.xlu1 %947 }
 0x105   :  { %1269 = vmatprep.mubr.bf16.mxu1 %v2927_v35 }
 0x106   :  { %v903_v57 = vmax.f32 %v839_v2, 0.0  ;;  %v911_v55 = vmax.f32 %v847_v13, 0.0  ;;  %1171 = vmatpush1.bf16.msra.mxu0 %v941_v48 }
 0x108   :  { %v943_v0 = vpack.c.bf16 %v911_v55, %v903_v57  ;;  %v2641_v37 = vpop.permute.xlu0 %962  ;;  %v2643_v34 = vpop.permute.xlu1 %957 }
 0x10a   :  { %1244 = vmatpush1.bf16.msra.mxu1 %v943_v0  ;;  %1622 = vmatmul.mubr.msk.bf16.vlgmr.msra.gmra.mrb[16].mxu0 %vm1005_vm2, %v2465_v3 }
 0x10b   :  { %1206 = vmatprep.mubr.bf16.mxu0 %v2927_v35 }
 0x10c   :  { %v2653_v2 = vpop.permute.xlu1 %967  ;;  %v2655_v55 = vpop.permute.xlu0 %972 }
 0x10d   :  { %1626 = vmatmul.mubr.msk.bf16.vlgmr.msra.gmra.mrb[16].mxu1 %vm1005_vm2, %v2465_v3 }
 0x10e   :  { %1279 = vmatprep.mubr.bf16.mxu1 %v2927_v35 }
 0x112   :  { %1623 = vmatmul.mubr.msk.bf16.gmra.mrb[20].mxu0 %vm1005_vm2, %v2512_v56 }
 0x113   :  { %1216 = vmatprep.mubr.bf16.mxu0 %v2927_v35 }
 0x115   :  { %1627 = vmatmul.mubr.msk.bf16.gmra.mrb[20].mxu1 %vm1005_vm2, %v2512_v56 }
 0x116   :  { %1289 = vmatprep.mubr.bf16.mxu1 %v2927_v35 }
 0x11a   :  { %1624 = vmatmul.mubr.msk.bf16.gmra.mrb[24].mxu0 %vm1005_vm2, %v2557_v46 }
 0x11b   :  { %1226 = vmatprep.mubr.bf16.mxu0 %v2927_v35 }
 0x11d   :  { %1628 = vmatmul.mubr.msk.bf16.gmra.mrb[24].mxu1 %vm1005_vm2, %v2557_v46 }
 0x11e   :  { %1299 = vmatprep.mubr.bf16.mxu1 %v2927_v35 }
 0x122   :  { %1625 = vmatmul.mubr.msk.bf16.gmra.mrb[28].mxu0 %vm1005_vm2, %v1655_v38 }
 0x123   :  { %1441 = vmatprep.mubr.bf16.mxu0 %v2927_v35 }
 0x125   :  { %1629 = vmatmul.mubr.msk.bf16.gmra.mrb[28].mxu1 %vm1005_vm2, %v1655_v38 }
 0x126   :  { %1482 = vmatprep.mubr.bf16.mxu1 %v2927_v35 }
 0x1bd   :  { %v1052_v3 = vpop.f32.mrb[0].mxu0  ;;  %v1125_v56 = vpop.f32.mrb[0].mxu1 }
 0x1be   :  { %v1053_v27 = vadd.f32 %v1052_v3, %v2631_v16  ;;  %v1126_v45 = vadd.f32 %v1125_v56, %v2631_v16  ;;  %v1054_v39 = vpop.f32.mrb[1].mxu0  ;;  %v1127_v17 = vpop.f32.mrb[1].mxu1 }
 0x1bf   :  { %v1055_v41 = vadd.f32 %v1054_v39, %v2631_v16  ;;  %v1128_v46 = vadd.f32 %v1127_v17, %v2631_v16  ;;  %v1056_v4 = vpop.f32.mrb[2].mxu0  ;;  %v1129_v1 = vpop.f32.mrb[2].mxu1 }
 0x1c0   :  { %v1057_v62 = vadd.f32 %v1056_v4, %v2629_v20  ;;  %v1130_v22 = vadd.f32 %v1129_v1, %v2629_v20  ;;  %v1058_v6 = vpop.f32.mrb[3].mxu0  ;;  %v1131_v23 = vpop.f32.mrb[3].mxu1  ;;  %v1310_v24 = vmax.f32 %v1053_v27, 0.0  ;;  %v1312_v14 = vmax.f32 %v1126_v45, 0.0 }
 0x1c1   :  { %v1059_v50 = vadd.f32 %v1058_v6, %v2629_v20  ;;  %v1132_v7 = vadd.f32 %v1131_v23, %v2629_v20  ;;  %v1311_v9 = vmax.f32 %v1055_v41, 0.0  ;;  %v1313_v31 = vmax.f32 %v1128_v46, 0.0 }
 0x1c2   :  { %v1318_v36 = vmax.f32 %v1057_v62, 0.0  ;;  %v1320_v12 = vmax.f32 %v1130_v22, 0.0 }
 0x1c3   :  { %v1319_v33 = vmax.f32 %v1059_v50, 0.0  ;;  %v1321_v21 = vmax.f32 %v1132_v7, 0.0 }
 0x1c4   :  { %v1374_v11 = vpack.c.bf16 %v1318_v36, %v1310_v24  ;;  %v1376_v42 = vpack.c.bf16 %v1320_v12, %v1312_v14 }
 0x1c5   :  { %v1375_v10 = vpack.c.bf16 %v1319_v33, %v1311_v9  ;;  %v1377_v43 = vpack.c.bf16 %v1321_v21, %v1313_v31  ;;  %v1062_v40 = vpop.f32.mrb[4].mxu0  ;;  %v2665_v33 = vpop.permute.xlu1 %977 }
 0x1c6   :  { %v1063_v15 = vadd.f32 %v1062_v40, %v2643_v34  ;;  %v1135_v5 = vpop.f32.mrb[4].mxu1  ;;  %v1064_v59 = vpop.f32.mrb[5].mxu0 }
 0x1c7   :  { %v1136_v54 = vadd.f32 %v1135_v5, %v2643_v34  ;;  %v1065_v58 = vadd.f32 %v1064_v59, %v2643_v34  ;;  %v1137_v18 = vpop.f32.mrb[5].mxu1  ;;  %v1066_v19 = vpop.f32.mrb[6].mxu0  ;;  %1409 = vmatprep.subr.bf16.mxu0 %v1375_v10  ;;  %1450 = vmatprep.subr.bf16.mxu1 %v1377_v43 }
 0x1c8   :  { %v1138_v61 = vadd.f32 %v1137_v18, %v2643_v34  ;;  %v1067_v53 = vadd.f32 %v1066_v19, %v2641_v37  ;;  %v1139_v26 = vpop.f32.mrb[6].mxu1  ;;  %v1068_v49 = vpop.f32.mrb[7].mxu0  ;;  %1410 = vmatpush1.bf16.msra.mxu0 %v1374_v11  ;;  %1451 = vmatpush1.bf16.msra.mxu1 %v1376_v42  ;;  %v1326_v30 = vmax.f32 %v1063_v15, 0.0 }
 0x1c9   :  { %v1140_v38 = vadd.f32 %v1139_v26, %v2641_v37  ;;  %v1069_v44 = vadd.f32 %v1068_v49, %v2641_v37  ;;  %v1141_v29 = vpop.f32.mrb[7].mxu1  ;;  %v1328_v51 = vmax.f32 %v1136_v54, 0.0  ;;  %v1327_v32 = vmax.f32 %v1065_v58, 0.0  ;;  %v2667_v43 = vpop.permute.xlu0 %982 }
 0x1ca   :  { %v1334_v60 = vmax.f32 %v1067_v53, 0.0  ;;  %v1142_v52 = vadd.f32 %v1141_v29, %v2641_v37  ;;  %v1329_v8 = vmax.f32 %v1138_v61, 0.0 }
 0x1cb   :  { %v1336_v28 = vmax.f32 %v1140_v38, 0.0  ;;  %v1335_v47 = vmax.f32 %v1069_v44, 0.0 }
 0x1cc   :  { %v1382_v63 = vpack.c.bf16 %v1334_v60, %v1326_v30  ;;  %v1337_v25 = vmax.f32 %v1142_v52, 0.0 }
 0x1cd   :  { %v1384_v13 = vpack.c.bf16 %v1336_v28, %v1328_v51  ;;  %v1383_v48 = vpack.c.bf16 %v1335_v47, %v1327_v32  ;;  %v1072_v57 = vpop.f32.mrb[8].mxu0 }
 0x1ce   :  { %v1385_v0 = vpack.c.bf16 %v1337_v25, %v1329_v8  ;;  %v1073_v3 = vadd.f32 %v1072_v57, %v2653_v2  ;;  %v1074_v56 = vpop.f32.mrb[9].mxu0  ;;  %v1145_v27 = vpop.f32.mrb[8].mxu1 }
 0x1cf   :  { %v1075_v45 = vadd.f32 %v1074_v56, %v2653_v2  ;;  %v1076_v39 = vpop.f32.mrb[10].mxu0  ;;  %1411 = vmatprep.subr.bf16.mxu0 %v1383_v48  ;;  %v1146_v17 = vadd.f32 %v1145_v27, %v2653_v2  ;;  %v1147_v41 = vpop.f32.mrb[9].mxu1 }
 0x1d0   :  { %v1077_v46 = vadd.f32 %v1076_v39, %v2655_v55  ;;  %1452 = vmatprep.subr.bf16.mxu1 %v1385_v0  ;;  %v1078_v4 = vpop.f32.mrb[11].mxu0  ;;  %1412 = vmatpush1.bf16.msra.mxu0 %v1382_v63  ;;  %v1148_v1 = vadd.f32 %v1147_v41, %v2653_v2  ;;  %v1149_v62 = vpop.f32.mrb[10].mxu1  ;;  %v1342_v6 = vmax.f32 %v1073_v3, 0.0 }
 0x1d1   :  { %v1079_v22 = vadd.f32 %v1078_v4, %v2655_v55  ;;  %1453 = vmatpush1.bf16.msra.mxu1 %v1384_v13  ;;  %v1150_v50 = vadd.f32 %v1149_v62, %v2655_v55  ;;  %v1151_v7 = vpop.f32.mrb[11].mxu1  ;;  %v1343_v24 = vmax.f32 %v1075_v45, 0.0  ;;  %v1344_v12 = vmax.f32 %v1146_v17, 0.0  ;;  %v2684_v62 = vld [vmem:[%s2740_s4] sm:$0xf] }
 0x1d2   :  { %v1350_v23 = vmax.f32 %v1077_v46, 0.0  ;;  %v1152_v36 = vadd.f32 %v1151_v7, %v2655_v55  ;;  %v1345_v21 = vmax.f32 %v1148_v1, 0.0 }
 0x1d3   :  { %v1351_v14 = vmax.f32 %v1079_v22, 0.0  ;;  %v1352_v31 = vmax.f32 %v1150_v50, 0.0 }
 0x1d4   :  { %v1390_v9 = vpack.c.bf16 %v1350_v23, %v1342_v6  ;;  %v1353_v42 = vmax.f32 %v1152_v36, 0.0 }
 0x1d5   :  { %v1391_v11 = vpack.c.bf16 %v1351_v14, %v1343_v24  ;;  %v1082_v10 = vpop.f32.mrb[12].mxu0  ;;  %v1392_v40 = vpack.c.bf16 %v1352_v31, %v1344_v12 }
 0x1d6   :  { %v1083_v15 = vadd.f32 %v1082_v10, %v2665_v33  ;;  %v1084_v5 = vpop.f32.mrb[13].mxu0  ;;  %v1393_v59 = vpack.c.bf16 %v1353_v42, %v1345_v21 }
 0x1d7   :  { %v1155_v54 = vpop.f32.mrb[12].mxu1  ;;  %v1085_v58 = vadd.f32 %v1084_v5, %v2665_v33  ;;  %v1086_v18 = vpop.f32.mrb[14].mxu0  ;;  %1413 = vmatprep.subr.bf16.mxu0 %v1391_v11 }
 0x1d8   :  { %v1156_v19 = vadd.f32 %v1155_v54, %v2665_v33  ;;  %v1157_v61 = vpop.f32.mrb[13].mxu1  ;;  %v1087_v53 = vadd.f32 %v1086_v18, %v2667_v43  ;;  %v1088_v26 = vpop.f32.mrb[15].mxu0  ;;  %1414 = vmatpush1.bf16.msra.mxu0 %v1390_v9  ;;  %1454 = vmatprep.subr.bf16.mxu1 %v1393_v59  ;;  %v1358_v29 = vmax.f32 %v1083_v15, 0.0 }
 0x1d9   :  { %v1158_v49 = vadd.f32 %v1157_v61, %v2665_v33  ;;  %v1159_v38 = vpop.f32.mrb[14].mxu1  ;;  %v1089_v44 = vadd.f32 %v1088_v26, %v2667_v43  ;;  %1455 = vmatpush1.bf16.msra.mxu1 %v1392_v40  ;;  %v1359_v51 = vmax.f32 %v1085_v58, 0.0 }
 0x1da   :  { %v1366_v30 = vmax.f32 %v1087_v53, 0.0  ;;  %v1160_v60 = vadd.f32 %v1159_v38, %v2667_v43  ;;  %v1161_v52 = vpop.f32.mrb[15].mxu1  ;;  %v1360_v47 = vmax.f32 %v1156_v19, 0.0 }
 0x1db   :  { %v1367_v32 = vmax.f32 %v1089_v44, 0.0  ;;  %v1162_v28 = vadd.f32 %v1161_v52, %v2667_v43  ;;  %v1361_v25 = vmax.f32 %v1158_v49, 0.0 }
 0x1dc   :  { %v1398_v8 = vpack.c.bf16 %v1366_v30, %v1358_v29  ;;  %v1368_v63 = vmax.f32 %v1160_v60, 0.0 }
 0x1dd   :  { %v1399_v13 = vpack.c.bf16 %v1367_v32, %v1359_v51  ;;  %v1369_v48 = vmax.f32 %v1162_v28, 0.0  ;;  %v1198_v57 = vpop.f32.mrb[16].mxu0 }
 0x1de   :  { %v1400_v0 = vpack.c.bf16 %v1368_v63, %v1360_v47  ;;  %v1199_v3 = vadd.f32 %v1198_v57, %v2631_v16  ;;  %v1200_v56 = vpop.f32.mrb[17].mxu0 }
 0x1df   :  { %v1401_v27 = vpack.c.bf16 %v1369_v48, %v1361_v25  ;;  %v1201_v39 = vadd.f32 %v1200_v56, %v2631_v16  ;;  %v1202_v17 = vpop.f32.mrb[18].mxu0  ;;  %1415 = vmatprep.subr.bf16.mxu0 %v1399_v13 }
 0x1e0   :  { %v1271_v45 = vpop.f32.mrb[16].mxu1  ;;  %v1203_v4 = vadd.f32 %v1202_v17, %v2629_v20  ;;  %v1204_v1 = vpop.f32.mrb[19].mxu0  ;;  %1416 = vmatpush1.bf16.msra.mxu0 %v1398_v8  ;;  %v1314_v50 = vmax.f32 %v1199_v3, 0.0 }
 0x1e1   :  { %v1272_v41 = vadd.f32 %v1271_v45, %v2631_v16  ;;  %v1273_v46 = vpop.f32.mrb[17].mxu1  ;;  %1456 = vmatprep.subr.bf16.mxu1 %v1401_v27  ;;  %v1205_v23 = vadd.f32 %v1204_v1, %v2629_v20  ;;  %v1315_v36 = vmax.f32 %v1201_v39, 0.0 }
 0x1e2   :  { %v1274_v22 = vadd.f32 %v1273_v46, %v2631_v16  ;;  %v1275_v6 = vpop.f32.mrb[18].mxu1  ;;  %v1322_v7 = vmax.f32 %v1203_v4, 0.0  ;;  %1457 = vmatpush1.bf16.msra.mxu1 %v1400_v0 }
 0x1e3   :  { %v1276_v24 = vadd.f32 %v1275_v6, %v2629_v20  ;;  %v1277_v14 = vpop.f32.mrb[19].mxu1  ;;  %v1323_v12 = vmax.f32 %v1205_v23, 0.0  ;;  %1630 = vmatmul.mubr.msk.bf16.vlgmr.msra.gmra.mrb[32].mxu0 %vm1005_vm2, %v2684_v62  ;;  %v1316_v31 = vmax.f32 %v1272_v41, 0.0 }
 0x1e4   :  { %v1278_v9 = vadd.f32 %v1277_v14, %v2629_v20  ;;  %v1378_v21 = vpack.c.bf16 %v1322_v7, %v1314_v50  ;;  %1523 = vmatprep.mubr.bf16.mxu0 %v2927_v35  ;;  %v1317_v11 = vmax.f32 %v1274_v22, 0.0 }
 0x1e5   :  { %v1324_v16 = vmax.f32 %v1276_v24, 0.0  ;;  %v1379_v42 = vpack.c.bf16 %v1323_v12, %v1315_v36  ;;  %1631 = vmatmul.mubr.msk.bf16.vlgmr.msra.gmra.mrb[32].mxu1 %vm1005_vm2, %v2684_v62  ;;  %v1208_v40 = vpop.f32.mrb[20].mxu0 }
 0x1e6   :  { %v1325_v10 = vmax.f32 %v1278_v9, 0.0  ;;  %v1209_v5 = vadd.f32 %v1208_v40, %v2643_v34  ;;  %v1210_v59 = vpop.f32.mrb[21].mxu0  ;;  %1564 = vmatprep.mubr.bf16.mxu1 %v2927_v35 }
 0x1e7   :  { %v1380_v15 = vpack.c.bf16 %v1324_v16, %v1316_v31  ;;  %v1211_v58 = vadd.f32 %v1210_v59, %v2643_v34  ;;  %v1212_v18 = vpop.f32.mrb[22].mxu0  ;;  %1491 = vmatprep.subr.bf16.mxu0 %v1379_v42 }
 0x1e8   :  { %v1381_v20 = vpack.c.bf16 %v1325_v10, %v1317_v11  ;;  %v1281_v54 = vpop.f32.mrb[20].mxu1  ;;  %v1213_v53 = vadd.f32 %v1212_v18, %v2641_v37  ;;  %v1214_v26 = vpop.f32.mrb[23].mxu0  ;;  %1492 = vmatpush1.bf16.msra.mxu0 %v1378_v21  ;;  %v1330_v35 = vmax.f32 %v1209_v5, 0.0 }
 0x1e9   :  { %v1282_v19 = vadd.f32 %v1281_v54, %v2643_v34  ;;  %v1283_v61 = vpop.f32.mrb[21].mxu1  ;;  %v1215_v44 = vadd.f32 %v1214_v26, %v2641_v37  ;;  %v1331_v52 = vmax.f32 %v1211_v58, 0.0 }
 0x1ea   :  { %v1284_v49 = vadd.f32 %v1283_v61, %v2643_v34  ;;  %v1285_v38 = vpop.f32.mrb[22].mxu1  ;;  %1532 = vmatprep.subr.bf16.mxu1 %v1381_v20  ;;  %v1338_v29 = vmax.f32 %v1213_v53, 0.0 }
 0x1eb   :  { %v1286_v30 = vadd.f32 %v1285_v38, %v2641_v37  ;;  %v1287_v60 = vpop.f32.mrb[23].mxu1  ;;  %1533 = vmatpush1.bf16.msra.mxu1 %v1380_v15  ;;  %v1339_v51 = vmax.f32 %v1215_v44, 0.0  ;;  %v1332_v28 = vmax.f32 %v1282_v19, 0.0 }
 0x1ec   :  { %v1288_v32 = vadd.f32 %v1287_v60, %v2641_v37  ;;  %v1386_v47 = vpack.c.bf16 %v1338_v29, %v1330_v35  ;;  %v1333_v63 = vmax.f32 %v1284_v49, 0.0 }
 0x1ed   :  { %v1340_v8 = vmax.f32 %v1286_v30, 0.0  ;;  %v1387_v25 = vpack.c.bf16 %v1339_v51, %v1331_v52  ;;  %v1218_v13 = vpop.f32.mrb[24].mxu0 }
 0x1ee   :  { %v1341_v34 = vmax.f32 %v1288_v32, 0.0  ;;  %v1219_v57 = vadd.f32 %v1218_v13, %v2653_v2  ;;  %v1220_v0 = vpop.f32.mrb[25].mxu0 }
 0x1ef   :  { %v1388_v48 = vpack.c.bf16 %v1340_v8, %v1332_v28  ;;  %v1221_v27 = vadd.f32 %v1220_v0, %v2653_v2  ;;  %v1222_v45 = vpop.f32.mrb[26].mxu0  ;;  %1493 = vmatprep.subr.bf16.mxu0 %v1387_v25  ;;  %v1576_v8 = vpop.permute.xlu1 %1575 }
 0x1f0   :  { %v1389_v3 = vpack.c.bf16 %v1341_v34, %v1333_v63  ;;  %v1291_v56 = vpop.f32.mrb[24].mxu1  ;;  %v1223_v17 = vadd.f32 %v1222_v45, %v2655_v55  ;;  %v1224_v41 = vpop.f32.mrb[27].mxu0  ;;  %1494 = vmatpush1.bf16.msra.mxu0 %v1386_v47  ;;  %v1346_v22 = vmax.f32 %v1219_v57, 0.0 }
 0x1f1   :  { %v1292_v39 = vadd.f32 %v1291_v56, %v2653_v2  ;;  %v1293_v37 = vpop.f32.mrb[25].mxu1  ;;  %v1225_v1 = vadd.f32 %v1224_v41, %v2655_v55  ;;  %v1347_v7 = vmax.f32 %v1221_v27, 0.0 }
 0x1f2   :  { %v1294_v46 = vadd.f32 %v1293_v37, %v2653_v2  ;;  %v1295_v4 = vpop.f32.mrb[26].mxu1  ;;  %1534 = vmatprep.subr.bf16.mxu1 %v1389_v3  ;;  %v1354_v6 = vmax.f32 %v1223_v17, 0.0 }
 0x1f3   :  { %v1296_v23 = vadd.f32 %v1295_v4, %v2655_v55  ;;  %v1297_v50 = vpop.f32.mrb[27].mxu1  ;;  %1535 = vmatpush1.bf16.msra.mxu1 %v1388_v48  ;;  %v1355_v24 = vmax.f32 %v1225_v1, 0.0  ;;  %v1348_v36 = vmax.f32 %v1292_v39, 0.0 }
 0x1f4   :  { %v1298_v14 = vadd.f32 %v1297_v50, %v2655_v55  ;;  %v1394_v12 = vpack.c.bf16 %v1354_v6, %v1346_v22  ;;  %v1349_v31 = vmax.f32 %v1294_v46, 0.0 }
 0x1f5   :  { %v1356_v9 = vmax.f32 %v1296_v23, 0.0  ;;  %v1395_v21 = vpack.c.bf16 %v1355_v24, %v1347_v7  ;;  %v1228_v16 = vpop.f32.mrb[28].mxu0 }
 0x1f6   :  { %v1357_v2 = vmax.f32 %v1298_v14, 0.0  ;;  %v1229_v42 = vadd.f32 %v1228_v16, %v2665_v33  ;;  %v1230_v10 = vpop.f32.mrb[29].mxu0 }
 0x1f7   :  { %v1396_v11 = vpack.c.bf16 %v1356_v9, %v1348_v36  ;;  %v1231_v5 = vadd.f32 %v1230_v10, %v2665_v33  ;;  %v1232_v59 = vpop.f32.mrb[30].mxu0  ;;  %1495 = vmatprep.subr.bf16.mxu0 %v1395_v21 }
 0x1f8   :  { %v1397_v40 = vpack.c.bf16 %v1357_v2, %v1349_v31  ;;  %v1301_v15 = vpop.f32.mrb[28].mxu1  ;;  %v1233_v54 = vadd.f32 %v1232_v59, %v2667_v43  ;;  %v1234_v58 = vpop.f32.mrb[31].mxu0  ;;  %1496 = vmatpush1.bf16.msra.mxu0 %v1394_v12  ;;  %v1362_v53 = vmax.f32 %v1229_v42, 0.0 }
 0x1f9   :  { %v1302_v20 = vadd.f32 %v1301_v15, %v2665_v33  ;;  %v1303_v55 = vpop.f32.mrb[29].mxu1  ;;  %v1235_v61 = vadd.f32 %v1234_v58, %v2667_v43  ;;  %v1363_v44 = vmax.f32 %v1231_v5, 0.0 }
 0x1fa   :  { %v1304_v18 = vadd.f32 %v1303_v55, %v2665_v33  ;;  %v1305_v19 = vpop.f32.mrb[30].mxu1  ;;  %1536 = vmatprep.subr.bf16.mxu1 %v1397_v40  ;;  %v1370_v26 = vmax.f32 %v1233_v54, 0.0 }
 0x1fb   :  { %v1306_v49 = vadd.f32 %v1305_v19, %v2667_v43  ;;  %v1307_v38 = vpop.f32.mrb[31].mxu1  ;;  %1537 = vmatpush1.bf16.msra.mxu1 %v1396_v11  ;;  %v1371_v35 = vmax.f32 %v1235_v61, 0.0  ;;  %v1364_v30 = vmax.f32 %v1302_v20, 0.0 }
 0x1fc   :  { %v1308_v29 = vadd.f32 %v1307_v38, %v2667_v43  ;;  %v1402_v60 = vpack.c.bf16 %v1370_v26, %v1362_v53  ;;  %v1365_v51 = vmax.f32 %v1304_v18, 0.0 }
 0x1fd   :  { %v1372_v52 = vmax.f32 %v1306_v49, 0.0  ;;  %v1403_v32 = vpack.c.bf16 %v1371_v35, %v1363_v44 }
 0x1fe   :  { %v1373_v33 = vmax.f32 %v1308_v29, 0.0 }
 0x1ff   :  { %v1404_v28 = vpack.c.bf16 %v1372_v52, %v1364_v30  ;;  %1497 = vmatprep.subr.bf16.mxu0 %v1403_v32 }
 0x200   :  { %v1405_v47 = vpack.c.bf16 %v1373_v33, %v1365_v51  ;;  %1498 = vmatpush1.bf16.msra.mxu0 %v1402_v60 }
 0x202   :  { %1538 = vmatprep.subr.bf16.mxu1 %v1405_v47 }
 0x203   :  { %1539 = vmatpush1.bf16.msra.mxu1 %v1404_v28  ;;  %1632 = vmatmul.mubr.msk.bf16.vlgmr.msra.gmra.mrb[36].mxu0 %vm1005_vm2, %v2684_v62 }
 0x206   :  { %1633 = vmatmul.mubr.msk.bf16.vlgmr.msra.gmra.mrb[36].mxu1 %vm1005_vm2, %v2684_v62 }
 0x2b6   :  { %v1443_v43 = vpop.f32.mrb[32].mxu0 }
 0x2b7   :  { %v1578_v63 = vadd.f32 %v1576_v8, %v1443_v43  ;;  %v1445_v25 = vpop.f32.mrb[33].mxu0 }
 0x2b8   :  { %v1484_v34 = vpop.f32.mrb[32].mxu1  ;;  %v1579_v13 = vadd.f32 %v1576_v8, %v1445_v25  ;;  %v1447_v48 = vpop.f32.mrb[34].mxu0 }
 0x2b9   :  { %v1580_v57 = vadd.f32 %v1576_v8, %v1484_v34  ;;  %v1486_v0 = vpop.f32.mrb[33].mxu1  ;;  %v1448_v3 = vpop.f32.mrb[35].mxu0 }
 0x2ba   :  { %v1594_v56 = vcombine.low %v1578_v63, %v1579_v13  ;;  %v1581_v27 = vadd.f32 %v1576_v8, %v1486_v0  ;;  %v1488_v45 = vpop.f32.mrb[34].mxu1 }
 0x2bb   :  { %v1489_v39 = vpop.f32.mrb[35].mxu1 }
 0x2bc   :  { %1602 = vst [vmem:[%s2744_s8] sm:$0x77] %v1594_v56  ;;  %v1595_v37 = vcombine.low %v1580_v57, %v1581_v27 }
 0x2be   :  { %1603 = vst [vmem:[%s2744_s8 + $0x8] sm:$0x77] %v1595_v37 }
 0x2d6   :  { %v1525_v62 = vpop.f32.mrb[36].mxu0 }
 0x2d7   :  { %v1582_v17 = vadd.f32 %v1576_v8, %v1525_v62  ;;  %v1527_v41 = vpop.f32.mrb[37].mxu0 }
 0x2d8   :  { %v1583_v4 = vadd.f32 %v1576_v8, %v1527_v41  ;;  %v1529_v1 = vpop.f32.mrb[38].mxu0 }
 0x2d9   :  { %v1566_v46 = vpop.f32.mrb[36].mxu1  ;;  %v1530_v23 = vpop.f32.mrb[39].mxu0 }
 0x2da   :  { %v1584_v22 = vadd.f32 %v1576_v8, %v1566_v46  ;;  %v1568_v6 = vpop.f32.mrb[37].mxu1  ;;  %v1596_v50 = vcombine.low %v1582_v17, %v1583_v4 }
 0x2db   :  { %v1585_v7 = vadd.f32 %v1576_v8, %v1568_v6  ;;  %v1570_v24 = vpop.f32.mrb[38].mxu1 }
 0x2dc   :  { %v1571_v14 = vpop.f32.mrb[39].mxu1  ;;  %1604 = vst [vmem:[%s2744_s8 + $0x10] sm:$0x77] %v1596_v50 }
 0x2dd   :  { %v1597_v36 = vcombine.low %v1584_v22, %v1585_v7 }
 0x2df   :  { %1605 = vst [vmem:[%s2744_s8 + $0x18] sm:$0x77] %v1597_v36 }

</bundles_post_ra>
